<compile_context>
chip_gen: v6e
topology: v6e:2x2x1
jax: 0.10.0
libtpu: 0.0.40
codegen_flags: <defaults>
</compile_context>

<pallas_src>
import jax
import jax.numpy as jnp
from jax.experimental import pallas as pl
from jax.experimental.pallas import tpu as pltpu

_LANE = 128


def _round_up(n, m):
    return ((n + m - 1) // m) * m


def _pad2(a, rows, cols):
    return jnp.pad(a, ((0, rows - a.shape[0]), (0, cols - a.shape[1])))


# ----------------------------------------------------------------------------
# Kernel: full VAE forward for one batch tile. Weights are VMEM-resident.
# ----------------------------------------------------------------------------
def _vae_forward_kernel(
    x_ref, eps_ref,
    w_e1_ref, b_e1_ref,          # encoder Linear(input_dim, h1) + ReLU
    w_e2_ref, b_e2_ref,          # encoder Linear(h1, h2) + ReLU
    w_h_ref, b_h_ref,            # fused [mu | log_var] head Linear(h2, 2*latent)
    w_d1_ref, b_d1_ref,          # decoder Linear(latent, h2) + ReLU
    w_d2_ref, b_d2_ref,          # decoder Linear(h2, h1) + ReLU
    w_d3_ref, b_d3_ref,          # decoder Linear(h1, input_dim) + Sigmoid
    recon_ref, mulv_ref,
):
    f32 = jnp.float32
    bf16 = jnp.bfloat16
    lat_p = eps_ref.shape[-1]

    x = x_ref[...]                                            # bf16 (TB, Dp)

    # ---- encoder (bf16 MXU, f32 accumulate / elementwise) ----
    h = jnp.dot(x, w_e1_ref[...], preferred_element_type=f32) + b_e1_ref[...]
    h = jnp.maximum(h, 0.0)
    h = jnp.dot(h.astype(bf16), w_e2_ref[...], preferred_element_type=f32) + b_e2_ref[...]
    h = jnp.maximum(h, 0.0)

    # ---- fused latent heads: one MXU push, lane-dense (TB, 2*lat_p) ----
    mulv = jnp.dot(h.astype(bf16), w_h_ref[...], preferred_element_type=f32) + b_h_ref[...]
    mu = mulv[:, :lat_p]
    log_var = mulv[:, lat_p:]

    # ---- reparameterize: z = mu + eps * exp(0.5 * log_var) ----
    std = jnp.exp(0.5 * log_var)
    z = mu + eps_ref[...] * std

    # ---- decoder ----
    d = jnp.dot(z.astype(bf16), w_d1_ref[...], preferred_element_type=f32) + b_d1_ref[...]
    d = jnp.maximum(d, 0.0)
    d = jnp.dot(d.astype(bf16), w_d2_ref[...], preferred_element_type=f32) + b_d2_ref[...]
    d = jnp.maximum(d, 0.0)
    logits = jnp.dot(d.astype(bf16), w_d3_ref[...], preferred_element_type=f32) + b_d3_ref[...]
    # sigmoid: exp on EUP, approx reciprocal on EUP (frees VALU cycles)
    recon = pl.reciprocal(1.0 + jnp.exp(-logits), approx=True)

    recon_ref[...] = recon.astype(recon_ref.dtype)
    mulv_ref[...] = mulv.astype(mulv_ref.dtype)


# ----------------------------------------------------------------------------
# Wrapper: pads/fuses/casts parameters, sets up the batch-tiled grid.
# ----------------------------------------------------------------------------
@jax.jit
def vae_forward(x, eps, params):
    batch, input_dim = x.shape
    h1 = params["w_e1"].shape[1]
    h2 = params["w_e2"].shape[1]
    latent = params["w_mu"].shape[1]

    f32 = jnp.float32
    bf16 = jnp.bfloat16

    # Pad every feature dim to a full 128-lane multiple.
    d_p = _round_up(input_dim, _LANE)
    h1_p = _round_up(h1, _LANE)
    h2_p = _round_up(h2, _LANE)
    l_p = _round_up(latent, _LANE)

    # Batch tiling: TB rows per grid step.
    tb = min(128, _round_up(batch, 8))
    b_p = _round_up(batch, tb)
    grid = (b_p // tb,)

    # ---- pack parameters: bf16 weights (halves DMA bytes), f32 biases ----
    w_e1 = _pad2(params["w_e1"], d_p, h1_p).astype(bf16)
    b_e1 = _pad2(params["b_e1"], 1, h1_p).astype(f32)
    w_e2 = _pad2(params["w_e2"], h1_p, h2_p).astype(bf16)
    b_e2 = _pad2(params["b_e2"], 1, h2_p).astype(f32)
    # Fused mu | log_var head.
    w_h = jnp.concatenate(
        [_pad2(params["w_mu"], h2_p, l_p), _pad2(params["w_lv"], h2_p, l_p)], axis=1
    ).astype(bf16)
    b_h = jnp.concatenate(
        [_pad2(params["b_mu"], 1, l_p), _pad2(params["b_lv"], 1, l_p)], axis=1
    ).astype(f32)
    w_d1 = _pad2(params["w_d1"], l_p, h2_p).astype(bf16)
    b_d1 = _pad2(params["b_d1"], 1, h2_p).astype(f32)
    w_d2 = _pad2(params["w_d2"], h2_p, h1_p).astype(bf16)
    b_d2 = _pad2(params["b_d2"], 1, h1_p).astype(f32)
    w_d3 = _pad2(params["w_d3"], h1_p, d_p).astype(bf16)
    b_d3 = _pad2(params["b_d3"], 1, d_p).astype(f32)

    x_p = _pad2(x, b_p, d_p).astype(bf16)
    eps_p = _pad2(eps, b_p, l_p).astype(f32)

    def tile_spec(cols):
        # Activation tile: marches along the batch axis with the grid.
        return pl.BlockSpec((tb, cols), lambda i: (i, 0))

    def resident_spec(arr):
        # Parameter: constant block index -> stays resident in VMEM.
        nd = arr.ndim
        return pl.BlockSpec(arr.shape, lambda i, _nd=nd: (0,) * _nd)

    weights = (w_e1, b_e1, w_e2, b_e2, w_h, b_h, w_d1, b_d1, w_d2, b_d2, w_d3, b_d3)

    recon_p, mulv_p = pl.pallas_call(
        _vae_forward_kernel,
        grid=grid,
        in_specs=[tile_spec(d_p), tile_spec(l_p)] + [resident_spec(w) for w in weights],
        out_specs=(tile_spec(d_p), tile_spec(2 * l_p)),
        out_shape=(
            jax.ShapeDtypeStruct((b_p, d_p), f32),          # reconstruction (padded)
            jax.ShapeDtypeStruct((b_p, 2 * l_p), f32),      # [mu | log_var] (padded)
        ),
        compiler_params=pltpu.CompilerParams(
            dimension_semantics=("parallel",),               # v7x: shard across 2 TCs
        ),
    )(x_p, eps_p, *weights)

    # Strip padding / split the lane-dense latent slab in plain JAX.
    recon = recon_p[:batch, :input_dim]
    mu = mulv_p[:batch, :latent]
    log_var = mulv_p[:batch, l_p:l_p + latent]
    return recon, mu, log_var


# ----------------------------------------------------------------------------
# Deterministic parameter construction (PyTorch-Linear-style uniform init,
# weights stored transposed as (in, out)).
# ----------------------------------------------------------------------------
def init_params(key, input_dim, hidden_dims, latent_dim):
    def linear(key, fan_in, fan_out):
        kw, kb = jax.random.split(key)
        bound = 1.0 / jnp.sqrt(fan_in)
        w = jax.random.uniform(kw, (fan_in, fan_out), jnp.float32, -bound, bound)
        b = jax.random.uniform(kb, (1, fan_out), jnp.float32, -bound, bound)
        return w, b

    h1, h2 = hidden_dims
    keys = jax.random.split(key, 7)
    params = {}
    params["w_e1"], params["b_e1"] = linear(keys[0], input_dim, h1)
    params["w_e2"], params["b_e2"] = linear(keys[1], h1, h2)
    params["w_mu"], params["b_mu"] = linear(keys[2], h2, latent_dim)
    params["w_lv"], params["b_lv"] = linear(keys[3], h2, latent_dim)
    params["w_d1"], params["b_d1"] = linear(keys[4], latent_dim, h2)
    params["w_d2"], params["b_d2"] = linear(keys[5], h2, h1)
    params["w_d3"], params["b_d3"] = linear(keys[6], h1, input_dim)
    return params


# ----------------------------------------------------------------------------
# Pure-JAX f32 reference.
# ----------------------------------------------------------------------------
def vae_forward_ref(x, eps, params):
    h = jax.nn.relu(x @ params["w_e1"] + params["b_e1"])
    h = jax.nn.relu(h @ params["w_e2"] + params["b_e2"])
    mu = h @ params["w_mu"] + params["b_mu"]
    log_var = h @ params["w_lv"] + params["b_lv"]
    z = mu + eps * jnp.exp(0.5 * log_var)
    d = jax.nn.relu(z @ params["w_d1"] + params["b_d1"])
    d = jax.nn.relu(d @ params["w_d2"] + params["b_d2"])
    recon = jax.nn.sigmoid(d @ params["w_d3"] + params["b_d3"])
    return recon, mu, log_var


if __name__ == "__main__":
    # Small shapes consistent with the module (flat input vectors).
    batch = 256            # exercises 2 grid steps at TB=128
    input_dim = 256
    hidden_dims = [128, 64]
    latent_dim = 32

    key = jax.random.PRNGKey(0)
    k_params, k_x, k_eps = jax.random.split(key, 3)

    params = init_params(k_params, input_dim, hidden_dims, latent_dim)
    x = jax.random.uniform(k_x, (batch, input_dim), jnp.float32)
    # torch.randn_like(std): the Gaussian noise for reparameterization,
    # passed in explicitly for determinism.
    eps = jax.random.normal(k_eps, (batch, latent_dim), jnp.float32)

    recon, mu, log_var = vae_forward(x, eps, params)
    jax.block_until_ready((recon, mu, log_var))

    # Correctness check against the pure-f32 reference. Tolerances account
    # for bf16 MXU operands (f32 accumulate) and the approx EUP reciprocal.
    recon_r, mu_r, log_var_r = vae_forward_ref(x, eps, params)
    assert recon.shape == (batch, input_dim)
    assert mu.shape == (batch, latent_dim)
    assert log_var.shape == (batch, latent_dim)
    assert jnp.allclose(recon, recon_r, atol=2e-2, rtol=2e-2)
    assert jnp.allclose(mu, mu_r, atol=2e-2, rtol=2e-2)
    assert jnp.allclose(log_var, log_var_r, atol=2e-2, rtol=2e-2)

    print("KERNEL_OK")
</pallas_src>

<mosaic_0001>
module attributes {stable_mosaic.version = 11 : i64} {
  func.func @_vae_forward_kernel(%arg0: i32, %arg1: memref<128x256xbf16, #tpu.memory_space<vmem>>, %arg2: memref<128x128xf32, #tpu.memory_space<vmem>>, %arg3: memref<256x128xbf16, #tpu.memory_space<vmem>>, %arg4: memref<1x128xf32, #tpu.memory_space<vmem>>, %arg5: memref<128x128xbf16, #tpu.memory_space<vmem>>, %arg6: memref<1x128xf32, #tpu.memory_space<vmem>>, %arg7: memref<128x256xbf16, #tpu.memory_space<vmem>>, %arg8: memref<1x256xf32, #tpu.memory_space<vmem>>, %arg9: memref<128x128xbf16, #tpu.memory_space<vmem>>, %arg10: memref<1x128xf32, #tpu.memory_space<vmem>>, %arg11: memref<128x128xbf16, #tpu.memory_space<vmem>>, %arg12: memref<1x128xf32, #tpu.memory_space<vmem>>, %arg13: memref<128x256xbf16, #tpu.memory_space<vmem>>, %arg14: memref<1x256xf32, #tpu.memory_space<vmem>>, %arg15: memref<128x256xf32, #tpu.memory_space<vmem>>, %arg16: memref<128x256xf32, #tpu.memory_space<vmem>>) attributes {dimension_semantics = [#tpu.dimension_semantics<parallel>], iteration_bounds = array<i64: 2>, scalar_prefetch = 0 : i64, scratch_operands = 0 : i64, tpu.core_type = #tpu.core_type<tc>, window_params = [{transform_indices = @transform_0, window_bounds = array<i64: 128, 256>}, {transform_indices = @transform_1, window_bounds = array<i64: 128, 128>}, {pipeline_mode = #tpu.pipeline_mode<synchronous>, transform_indices = @transform_2, window_bounds = array<i64: 256, 128>}, {pipeline_mode = #tpu.pipeline_mode<synchronous>, transform_indices = @transform_3, window_bounds = array<i64: 1, 128>}, {pipeline_mode = #tpu.pipeline_mode<synchronous>, transform_indices = @transform_4, window_bounds = array<i64: 128, 128>}, {pipeline_mode = #tpu.pipeline_mode<synchronous>, transform_indices = @transform_5, window_bounds = array<i64: 1, 128>}, {pipeline_mode = #tpu.pipeline_mode<synchronous>, transform_indices = @transform_6, window_bounds = array<i64: 128, 256>}, {pipeline_mode = #tpu.pipeline_mode<synchronous>, transform_indices = @transform_7, window_bounds = array<i64: 1, 256>}, {pipeline_mode = #tpu.pipeline_mode<synchronous>, transform_indices = @transform_8, window_bounds = array<i64: 128, 128>}, {pipeline_mode = #tpu.pipeline_mode<synchronous>, transform_indices = @transform_9, window_bounds = array<i64: 1, 128>}, {pipeline_mode = #tpu.pipeline_mode<synchronous>, transform_indices = @transform_10, window_bounds = array<i64: 128, 128>}, {pipeline_mode = #tpu.pipeline_mode<synchronous>, transform_indices = @transform_11, window_bounds = array<i64: 1, 128>}, {pipeline_mode = #tpu.pipeline_mode<synchronous>, transform_indices = @transform_12, window_bounds = array<i64: 128, 256>}, {pipeline_mode = #tpu.pipeline_mode<synchronous>, transform_indices = @transform_13, window_bounds = array<i64: 1, 256>}, {transform_indices = @transform_14, window_bounds = array<i64: 128, 256>}, {transform_indices = @transform_15, window_bounds = array<i64: 128, 256>}]} {
    %c0 = arith.constant 0 : index
    %c0_0 = arith.constant 0 : index
    %0 = vector.load %arg1[%c0, %c0_0] : memref<128x256xbf16, #tpu.memory_space<vmem>>, vector<128x256xbf16>
    %c0_1 = arith.constant 0 : index
    %c0_2 = arith.constant 0 : index
    %1 = vector.load %arg3[%c0_1, %c0_2] : memref<256x128xbf16, #tpu.memory_space<vmem>>, vector<256x128xbf16>
    %cst = arith.constant dense<0.000000e+00> : vector<128x128xf32>
    %2 = tpu.matmul %0, %1, %cst {dimension_numbers = #tpu.dot_dimension_numbers<[1], [0], [0], [1], [0, 0, 1, 1], [], []>} : vector<128x256xbf16>, vector<256x128xbf16>, vector<128x128xf32> -> vector<128x128xf32>
    %c0_3 = arith.constant 0 : index
    %c0_4 = arith.constant 0 : index
    %3 = vector.load %arg4[%c0_3, %c0_4] : memref<1x128xf32, #tpu.memory_space<vmem>>, vector<1x128xf32>
    %4 = vector.broadcast %3 : vector<1x128xf32> to vector<128x128xf32>
    %5 = arith.addf %2, %4 : vector<128x128xf32>
    %cst_5 = arith.constant 0.000000e+00 : f32
    %6 = vector.broadcast %cst_5 : f32 to vector<128x128xf32>
    %7 = arith.maximumf %5, %6 : vector<128x128xf32>
    %8 = arith.truncf %7 : vector<128x128xf32> to vector<128x128xbf16>
    %c0_6 = arith.constant 0 : index
    %c0_7 = arith.constant 0 : index
    %9 = vector.load %arg5[%c0_6, %c0_7] : memref<128x128xbf16, #tpu.memory_space<vmem>>, vector<128x128xbf16>
    %cst_8 = arith.constant dense<0.000000e+00> : vector<128x128xf32>
    %10 = tpu.matmul %8, %9, %cst_8 {dimension_numbers = #tpu.dot_dimension_numbers<[1], [0], [0], [1], [0, 0, 1, 1], [], []>} : vector<128x128xbf16>, vector<128x128xbf16>, vector<128x128xf32> -> vector<128x128xf32>
    %c0_9 = arith.constant 0 : index
    %c0_10 = arith.constant 0 : index
    %11 = vector.load %arg6[%c0_9, %c0_10] : memref<1x128xf32, #tpu.memory_space<vmem>>, vector<1x128xf32>
    %12 = vector.broadcast %11 : vector<1x128xf32> to vector<128x128xf32>
    %13 = arith.addf %10, %12 : vector<128x128xf32>
    %cst_11 = arith.constant 0.000000e+00 : f32
    %14 = vector.broadcast %cst_11 : f32 to vector<128x128xf32>
    %15 = arith.maximumf %13, %14 : vector<128x128xf32>
    %16 = arith.truncf %15 : vector<128x128xf32> to vector<128x128xbf16>
    %c0_12 = arith.constant 0 : index
    %c0_13 = arith.constant 0 : index
    %17 = vector.load %arg7[%c0_12, %c0_13] : memref<128x256xbf16, #tpu.memory_space<vmem>>, vector<128x256xbf16>
    %cst_14 = arith.constant dense<0.000000e+00> : vector<128x256xf32>
    %18 = tpu.matmul %16, %17, %cst_14 {dimension_numbers = #tpu.dot_dimension_numbers<[1], [0], [0], [1], [0, 0, 1, 1], [], []>} : vector<128x128xbf16>, vector<128x256xbf16>, vector<128x256xf32> -> vector<128x256xf32>
    %c0_15 = arith.constant 0 : index
    %c0_16 = arith.constant 0 : index
    %19 = vector.load %arg8[%c0_15, %c0_16] : memref<1x256xf32, #tpu.memory_space<vmem>>, vector<1x256xf32>
    %20 = vector.broadcast %19 : vector<1x256xf32> to vector<128x256xf32>
    %21 = arith.addf %18, %20 : vector<128x256xf32>
    %22 = vector.extract_strided_slice %21 {offsets = [0, 0], sizes = [128, 128], strides = [1, 1]} : vector<128x256xf32> to vector<128x128xf32>
    %23 = vector.extract_strided_slice %21 {offsets = [0, 128], sizes = [128, 128], strides = [1, 1]} : vector<128x256xf32> to vector<128x128xf32>
    %cst_17 = arith.constant 5.000000e-01 : f32
    %24 = vector.broadcast %cst_17 : f32 to vector<128x128xf32>
    %25 = arith.mulf %24, %23 : vector<128x128xf32>
    %26 = math.exp %25 : vector<128x128xf32>
    %c0_18 = arith.constant 0 : index
    %c0_19 = arith.constant 0 : index
    %27 = vector.load %arg2[%c0_18, %c0_19] : memref<128x128xf32, #tpu.memory_space<vmem>>, vector<128x128xf32>
    %28 = arith.mulf %27, %26 : vector<128x128xf32>
    %29 = arith.addf %22, %28 : vector<128x128xf32>
    %30 = arith.truncf %29 : vector<128x128xf32> to vector<128x128xbf16>
    %c0_20 = arith.constant 0 : index
    %c0_21 = arith.constant 0 : index
    %31 = vector.load %arg9[%c0_20, %c0_21] : memref<128x128xbf16, #tpu.memory_space<vmem>>, vector<128x128xbf16>
    %cst_22 = arith.constant dense<0.000000e+00> : vector<128x128xf32>
    %32 = tpu.matmul %30, %31, %cst_22 {dimension_numbers = #tpu.dot_dimension_numbers<[1], [0], [0], [1], [0, 0, 1, 1], [], []>} : vector<128x128xbf16>, vector<128x128xbf16>, vector<128x128xf32> -> vector<128x128xf32>
    %c0_23 = arith.constant 0 : index
    %c0_24 = arith.constant 0 : index
    %33 = vector.load %arg10[%c0_23, %c0_24] : memref<1x128xf32, #tpu.memory_space<vmem>>, vector<1x128xf32>
    %34 = vector.broadcast %33 : vector<1x128xf32> to vector<128x128xf32>
    %35 = arith.addf %32, %34 : vector<128x128xf32>
    %cst_25 = arith.constant 0.000000e+00 : f32
    %36 = vector.broadcast %cst_25 : f32 to vector<128x128xf32>
    %37 = arith.maximumf %35, %36 : vector<128x128xf32>
    %38 = arith.truncf %37 : vector<128x128xf32> to vector<128x128xbf16>
    %c0_26 = arith.constant 0 : index
    %c0_27 = arith.constant 0 : index
    %39 = vector.load %arg11[%c0_26, %c0_27] : memref<128x128xbf16, #tpu.memory_space<vmem>>, vector<128x128xbf16>
    %cst_28 = arith.constant dense<0.000000e+00> : vector<128x128xf32>
    %40 = tpu.matmul %38, %39, %cst_28 {dimension_numbers = #tpu.dot_dimension_numbers<[1], [0], [0], [1], [0, 0, 1, 1], [], []>} : vector<128x128xbf16>, vector<128x128xbf16>, vector<128x128xf32> -> vector<128x128xf32>
    %c0_29 = arith.constant 0 : index
    %c0_30 = arith.constant 0 : index
    %41 = vector.load %arg12[%c0_29, %c0_30] : memref<1x128xf32, #tpu.memory_space<vmem>>, vector<1x128xf32>
    %42 = vector.broadcast %41 : vector<1x128xf32> to vector<128x128xf32>
    %43 = arith.addf %40, %42 : vector<128x128xf32>
    %cst_31 = arith.constant 0.000000e+00 : f32
    %44 = vector.broadcast %cst_31 : f32 to vector<128x128xf32>
    %45 = arith.maximumf %43, %44 : vector<128x128xf32>
    %46 = arith.truncf %45 : vector<128x128xf32> to vector<128x128xbf16>
    %c0_32 = arith.constant 0 : index
    %c0_33 = arith.constant 0 : index
    %47 = vector.load %arg13[%c0_32, %c0_33] : memref<128x256xbf16, #tpu.memory_space<vmem>>, vector<128x256xbf16>
    %cst_34 = arith.constant dense<0.000000e+00> : vector<128x256xf32>
    %48 = tpu.matmul %46, %47, %cst_34 {dimension_numbers = #tpu.dot_dimension_numbers<[1], [0], [0], [1], [0, 0, 1, 1], [], []>} : vector<128x128xbf16>, vector<128x256xbf16>, vector<128x256xf32> -> vector<128x256xf32>
    %c0_35 = arith.constant 0 : index
    %c0_36 = arith.constant 0 : index
    %49 = vector.load %arg14[%c0_35, %c0_36] : memref<1x256xf32, #tpu.memory_space<vmem>>, vector<1x256xf32>
    %50 = vector.broadcast %49 : vector<1x256xf32> to vector<128x256xf32>
    %51 = arith.addf %48, %50 : vector<128x256xf32>
    %cst_37 = arith.constant 0.000000e+00 : f32
    %52 = vector.broadcast %cst_37 : f32 to vector<128x256xf32>
    %53 = arith.subf %52, %51 : vector<128x256xf32>
    %54 = math.exp %53 : vector<128x256xf32>
    %cst_38 = arith.constant 1.000000e+00 : f32
    %55 = vector.broadcast %cst_38 : f32 to vector<128x256xf32>
    %56 = arith.addf %55, %54 : vector<128x256xf32>
    %57 = tpu.reciprocal %56 {approx = true} : vector<128x256xf32> -> vector<128x256xf32>
    %c0_39 = arith.constant 0 : index
    %c0_40 = arith.constant 0 : index
    %58 = vector.load %arg15[%c0_39, %c0_40] : memref<128x256xf32, #tpu.memory_space<vmem>>, vector<128x256xf32>
    tpu.vector_store %arg15[%c0_39, %c0_40], %57 {strides = array<i32>} : memref<128x256xf32, #tpu.memory_space<vmem>>, vector<128x256xf32>,
    %c0_41 = arith.constant 0 : index
    %c0_42 = arith.constant 0 : index
    %59 = vector.load %arg16[%c0_41, %c0_42] : memref<128x256xf32, #tpu.memory_space<vmem>>, vector<128x256xf32>
    tpu.vector_store %arg16[%c0_41, %c0_42], %21 {strides = array<i32>} : memref<128x256xf32, #tpu.memory_space<vmem>>, vector<128x256xf32>,
    return
  }
  func.func @transform_0(%arg0: i32) -> (i32, i32) {
    %c0_i32 = arith.constant 0 : i32
    %c0_i32_0 = arith.constant 0 : i32
    return %arg0, %c0_i32 : i32, i32
  }
  func.func @transform_1(%arg0: i32) -> (i32, i32) {
    %c0_i32 = arith.constant 0 : i32
    %c0_i32_0 = arith.constant 0 : i32
    return %arg0, %c0_i32 : i32, i32
  }
  func.func @transform_2(%arg0: i32) -> (i32, i32) {
    %c0_i32 = arith.constant 0 : i32
    %c0_i32_0 = arith.constant 0 : i32
    %c0_i32_1 = arith.constant 0 : i32
    return %c0_i32, %c0_i32_0 : i32, i32
  }
  func.func @transform_3(%arg0: i32) -> (i32, i32) {
    %c0_i32 = arith.constant 0 : i32
    %c0_i32_0 = arith.constant 0 : i32
    %c0_i32_1 = arith.constant 0 : i32
    return %c0_i32, %c0_i32_0 : i32, i32
  }
  func.func @transform_4(%arg0: i32) -> (i32, i32) {
    %c0_i32 = arith.constant 0 : i32
    %c0_i32_0 = arith.constant 0 : i32
    %c0_i32_1 = arith.constant 0 : i32
    return %c0_i32, %c0_i32_0 : i32, i32
  }
  func.func @transform_5(%arg0: i32) -> (i32, i32) {
    %c0_i32 = arith.constant 0 : i32
    %c0_i32_0 = arith.constant 0 : i32
    %c0_i32_1 = arith.constant 0 : i32
    return %c0_i32, %c0_i32_0 : i32, i32
  }
  func.func @transform_6(%arg0: i32) -> (i32, i32) {
    %c0_i32 = arith.constant 0 : i32
    %c0_i32_0 = arith.constant 0 : i32
    %c0_i32_1 = arith.constant 0 : i32
    return %c0_i32, %c0_i32_0 : i32, i32
  }
  func.func @transform_7(%arg0: i32) -> (i32, i32) {
    %c0_i32 = arith.constant 0 : i32
    %c0_i32_0 = arith.constant 0 : i32
    %c0_i32_1 = arith.constant 0 : i32
    return %c0_i32, %c0_i32_0 : i32, i32
  }
  func.func @transform_8(%arg0: i32) -> (i32, i32) {
    %c0_i32 = arith.constant 0 : i32
    %c0_i32_0 = arith.constant 0 : i32
    %c0_i32_1 = arith.constant 0 : i32
    return %c0_i32, %c0_i32_0 : i32, i32
  }
  func.func @transform_9(%arg0: i32) -> (i32, i32) {
    %c0_i32 = arith.constant 0 : i32
    %c0_i32_0 = arith.constant 0 : i32
    %c0_i32_1 = arith.constant 0 : i32
    return %c0_i32, %c0_i32_0 : i32, i32
  }
  func.func @transform_10(%arg0: i32) -> (i32, i32) {
    %c0_i32 = arith.constant 0 : i32
    %c0_i32_0 = arith.constant 0 : i32
    %c0_i32_1 = arith.constant 0 : i32
    return %c0_i32, %c0_i32_0 : i32, i32
  }
  func.func @transform_11(%arg0: i32) -> (i32, i32) {
    %c0_i32 = arith.constant 0 : i32
    %c0_i32_0 = arith.constant 0 : i32
    %c0_i32_1 = arith.constant 0 : i32
    return %c0_i32, %c0_i32_0 : i32, i32
  }
  func.func @transform_12(%arg0: i32) -> (i32, i32) {
    %c0_i32 = arith.constant 0 : i32
    %c0_i32_0 = arith.constant 0 : i32
    %c0_i32_1 = arith.constant 0 : i32
    return %c0_i32, %c0_i32_0 : i32, i32
  }
  func.func @transform_13(%arg0: i32) -> (i32, i32) {
    %c0_i32 = arith.constant 0 : i32
    %c0_i32_0 = arith.constant 0 : i32
    %c0_i32_1 = arith.constant 0 : i32
    return %c0_i32, %c0_i32_0 : i32, i32
  }
  func.func @transform_14(%arg0: i32) -> (i32, i32) {
    %c0_i32 = arith.constant 0 : i32
    %c0_i32_0 = arith.constant 0 : i32
    return %arg0, %c0_i32 : i32, i32
  }
  func.func @transform_15(%arg0: i32) -> (i32, i32) {
    %c0_i32 = arith.constant 0 : i32
    %c0_i32_0 = arith.constant 0 : i32
    return %arg0, %c0_i32 : i32, i32
  }
}

</mosaic_0001>

<bundles_post_ra>
// kernel: vae_forward.1
= control target key start
LH: loop header
LB: loop body
LE: loop exit
PB: predicated region body
PF: predicated region fallthrough
CT: control target
= control target key end

     0   :  { %s3828_s0 = inlined_call_operand.vmem [shape: bf16[256,256], index: 0, kind: input, shape index: {}]   ;;  %s3829_s1 = inlined_call_operand.vmem [shape: f32[256,128], index: 1, kind: input, shape index: {}]   ;;  %s3830_s2 = inlined_call_operand.vmem [shape: bf16[256,128], index: 2, kind: input, shape index: {}]   ;;  %s3831_s3 = inlined_call_operand.vmem [shape: f32[1,128], index: 3, kind: input, shape index: {}]   ;;  %s3832_s4 = inlined_call_operand.vmem [shape: bf16[128,128], index: 4, kind: input, shape index: {}]   ;;  %s3833_s5 = inlined_call_operand.vmem [shape: f32[1,128], index: 5, kind: input, shape index: {}]   ;;  %s3834_s6 = inlined_call_operand.vmem [shape: bf16[128,256], index: 6, kind: input, shape index: {}]   ;;  %s3835_s7 = inlined_call_operand.vmem [shape: f32[1,256], index: 7, kind: input, shape index: {}]   ;;  %s3836_s8 = inlined_call_operand.vmem [shape: bf16[128,128], index: 8, kind: input, shape index: {}]   ;;  %s3837_s9 = inlined_call_operand.vmem [shape: f32[1,128], index: 9, kind: input, shape index: {}]   ;;  %s3838_s10 = inlined_call_operand.vmem [shape: bf16[128,128], index: 10, kind: input, shape index: {}]   ;;  %s3839_s11 = inlined_call_operand.vmem [shape: f32[1,128], index: 11, kind: input, shape index: {}]   ;;  %s3840_s12 = inlined_call_operand.vmem [shape: bf16[128,256], index: 12, kind: input, shape index: {}]   ;;  %s3841_s13 = inlined_call_operand.vmem [shape: f32[1,256], index: 13, kind: input, shape index: {}]   ;;  %s3842_s14 = inlined_call_operand.hbm [shape: f32[256,256], index: 14, kind: output, shape index: {0}]   ;;  %s3843_s15 = inlined_call_operand.vmem [shape: f32[256,256], index: 15, kind: output, shape index: {1}]  }
   0x1   :  { %3850 = sst [smem:[#allocation10_spill]] %s3828_s0 }
   0x2   :  { %21 = vsyncpa [#allocation3], 0 }
   0x3   :  { %23 = vsyncpa [#allocation3 + $0x1], 0  ;;  %s3160_s18 = smov 0   ;;  %s3162_s19 = smov 0  }
   0x4   :  { %s3164_s20 = smov 0   ;;  %s3166_s21 = smov 0  }
   0x5 LB: > { %3851 = sst [smem:[#allocation5_spill]] %s3062_s18  ;;  %s3181_s22 = sadd.s32 4294967295, %s3074_s21   ;;  %s3074_s21 = sphi %s3166_s21, %s3862_s21   ;;  %s3070_s20 = sphi %s3164_s20, %s3867_s20   ;;  %s3066_s19 = sphi %s3162_s19, %s3866_s19   ;;  %s3062_s18 = sphi %s3160_s18, %s3865_s18  }
   0x6   : > { %3852 = sst [smem:[#allocation6_spill]] %s3070_s20  ;;  %s2361_s23 = sadd.s32 4294967294, %s3074_s21  }
   0x7   : > { %s3185_s24 = sadd.s32 1, %s3074_s21   ;;  %s340_s25 = sadd.s32 1, %s3070_s20 }
   0x8   : > { %3853 = sst [smem:[#allocation7_spill]] %s3185_s24  ;;  %s337_s26 = ssub.s32 %s3074_s21, %s3185_s24 }
   0x9   : > { %p350_p0 = scmp.ne.s32.totalorder %s3070_s20, %s3066_s19  ;;  %p338_p1 = scmp.eq.s32.totalorder %s337_s26, 0 }
   0xa   : > { %p351_p2 = scmp.eq.s32.totalorder %s3181_s22, 1  ;;  %p356_p3 = scmp.ne.s32.totalorder %s3066_s19, %s3062_s18 }
   0xb   : > { %p357_p4 = scmp.eq.s32.totalorder %s2361_s23, 1  ;;  %p2364_p7 = scmp.ge.s32.totalorder %s3074_s21, 1 }
   0xc   : > { %s3196_s27 = scalar_select %p338_p1, %s3070_s20, %s340_s25  }
   0xd   : > { %p3198_p5 = por %p351_p2, %p350_p0  ;;  %p3202_p6 = por %p357_p4, %p356_p3 }
   0xe   : > { %3854 = sst [smem:[#allocation8_spill]] %s3196_s27  ;;  %p456_p8 = scmp.lt.s32.totalorder %s3074_s21, 3 }
   0xf   : > { %s3856_s29 = scalar_select %p3202_p6, 1, 0 }
  0x10   : > { %p457_p9 = pnand %p2364_p7, %p456_p8 }
  0x11   : > { %3857 = sst [smem:[#allocation9_spill]] %s3856_s29  ;;  %s2366_s17 = sshll.u32 (!%p457_p9), %s3181_s22, 4 }
  0x12   : > { %460 = sbr.rel (%p457_p9) target bundleno = 1426 (0x592), region = 76  ;;  %p517_p10 = scmp.lt.s32.totalorder (!%p457_p9), %s2366_s17, 31 }
  0x13   : > { %s3858_s0 = sld [smem:[#allocation10_spill]] (!%p457_p9)  ;;  %s3077_s23 = smov (!%p457_p9), [#allocation2]  }
  0x14   : > { %s3018_s27 = sshll.u32 (!%p457_p9), %s3077_s23, 4  ;;  %s3019_s27 = int_to_ptr.vmem [resolvable:$false] %s3018_s27 }
  0x17   : > { %v2742_v0 = vld [vmem:[%s3830_s2 + $0x78] sm:$0xff]   ;;  %v2744_v2 = vld [vmem:[%s3830_s2 + $0x70] sm:$0xff]   ;;  %v2746_v4 = vld [vmem:[%s3830_s2 + $0x68] sm:$0xff]   ;;  %s3869_s17 = smov (!%p517_p10, %s2366_s17), 31 }
  0x18   : > { %v2743_v1 = vld [vmem:[%s3830_s2 + $0x38] sm:$0xff]   ;;  %2476 = vmatprep.subr.bf16.mxu0 %v2742_v0  ;;  %v2745_v3 = vld [vmem:[%s3830_s2 + $0x30] sm:$0xff]   ;;  %v2747_v5 = vld [vmem:[%s3830_s2 + $0x28] sm:$0xff]   ;;  %s3849_s26 = sshll.u32 %s3869_s17, 3  ;;  %s3859_s30 = sshll.u32 %s3869_s17, 3 }
  0x19   : > { %2477 = vmatpush3.bf16.msra.mxu0 %v2743_v1  ;;  %v2748_v6 = vld [vmem:[%s3830_s2 + $0x60] sm:$0xff]   ;;  %v2750_v8 = vld [vmem:[%s3830_s2 + $0x58] sm:$0xff]   ;;  %s3244_s18 = scalar_lea.vmem %s3858_s0, %s3849_s26  ;;  %v2752_v10 = vld [vmem:[%s3830_s2 + $0x50] sm:$0xff]   ;;  %s2473_s26 = sshll.u32 %s3869_s17, 4 }
  0x1a   : > { %2478 = vmatprep.subr.bf16.mxu0 %v2744_v2  ;;  %v2749_v7 = vld [vmem:[%s3830_s2 + $0x20] sm:$0xff]   ;;  %v2751_v9 = vld [vmem:[%s3830_s2 + $0x18] sm:$0xff]   ;;  %v2753_v12 = vld [vmem:[%s3830_s2 + $0x10] sm:$0xff]   ;;  %s3455_s24 = scalar_lea.vmem %s3843_s15, %s2473_s26  ;;  %s3493_s29 = scalar_lea.vmem %s3829_s1, %s3859_s30 }
  0x1b   : > { %v2760_v11 = vld [vmem:[%s3244_s18 + $0x4] ss:$8 sps:$4 sm:$0xff]   ;;  %v2782_v17 = vld [vmem:[%s3832_s4 + $0x38] sm:$0xff]   ;;  %v2758_v18 = vld [vmem:[%s3244_s18] ss:$8 sps:$4 sm:$0xff]   ;;  %s505_s26 = sand.u32 1, %s3066_s19  }
  0x1c   : > { %801 = vmatprep.mubr.bf16.mxu0 %v2760_v11  ;;  %v2754_v13 = vld [vmem:[%s3830_s2 + $0x48] sm:$0xff]   ;;  %v2756_v15 = vld [vmem:[%s3830_s2 + $0x40] sm:$0xff]   ;;  %v2783_v19 = vld [vmem:[%s3832_s4 + $0x30] sm:$0xff]   ;;  %2588 = vmatprep.subr.bf16.mxu1 %v2782_v17  ;;  %s2365_s25 = sshll.u32 %s505_s26, 8  ;;  %s2475_s30 = sshll.u32 %s3181_s22, 12 }
  0x1d   : > { %2479 = vmatpush3.bf16.msra.mxu0 %v2745_v3  ;;  %v2755_v14 = vld [vmem:[%s3830_s2 + $0x8] sm:$0xff]   ;;  %v2757_v16 = vld [vmem:[%s3830_s2] sm:$0xff]   ;;  %v2761_v20 = vld [vmem:[%s3244_s18 + $0x14] ss:$8 sps:$4 sm:$0xff]   ;;  %2589 = vmatpush3.bf16.msra.mxu1 %v2782_v17  ;;  %s3729_s20 = scalar_lea.vmem [#allocation2], %s2365_s25  ;;  %s3780_s17 = scalar_lea.hbm %s3842_s14, %s2475_s30 }
  0x1e   : > { %2480 = vmatprep.subr.bf16.mxu0 %v2746_v4  ;;  %v2784_v21 = vld [vmem:[%s3832_s4 + $0x28] sm:$0xff]   ;;  %2590 = vmatprep.subr.bf16.mxu1 %v2783_v19  ;;  %v2763_v22 = vld [vmem:[%s3244_s18 + $0x10] ss:$8 sps:$4 sm:$0xff]   ;;  %v2767_v25 = vld [vmem:[%s3244_s18 + $0x34] ss:$8 sps:$4 sm:$0xff]   ;;  %s3020_s0 = scalar_lea.vmem %s3019_s27, 8192 }
  0x1f   : > { %v2764_v23 = vld [vmem:[%s3244_s18 + $0x24] ss:$8 sps:$4 sm:$0xff]   ;;  %v2766_v24 = vld [vmem:[%s3244_s18 + $0x20] ss:$8 sps:$4 sm:$0xff]   ;;  %v2769_v26 = vld [vmem:[%s3244_s18 + $0x30] ss:$8 sps:$4 sm:$0xff]  }
  0x20   : > { %v2770_v27 = vld [vmem:[%s3244_s18 + $0x44] ss:$8 sps:$4 sm:$0xff]   ;;  %v2772_v28 = vld [vmem:[%s3244_s18 + $0x40] ss:$8 sps:$4 sm:$0xff]   ;;  %v2773_v29 = vld [vmem:[%s3244_s18 + $0x54] ss:$8 sps:$4 sm:$0xff]  }
  0x21   : > { %2481 = vmatpush3.bf16.msra.mxu0 %v2747_v5  ;;  %2591 = vmatpush3.bf16.msra.mxu1 %v2783_v19  ;;  %v2775_v30 = vld [vmem:[%s3244_s18 + $0x50] ss:$8 sps:$4 sm:$0xff]   ;;  %v2776_v31 = vld [vmem:[%s3244_s18 + $0x64] ss:$8 sps:$4 sm:$0xff]   ;;  %v2778_v32 = vld [vmem:[%s3244_s18 + $0x60] ss:$8 sps:$4 sm:$0xff]  }
  0x22   : > { %2482 = vmatprep.subr.bf16.mxu0 %v2748_v6  ;;  %2592 = vmatprep.subr.bf16.mxu1 %v2784_v21  ;;  %v2779_v33 = vld [vmem:[%s3244_s18 + $0x74] ss:$8 sps:$4 sm:$0xff]   ;;  %v2781_v34 = vld [vmem:[%s3244_s18 + $0x70] ss:$8 sps:$4 sm:$0xff]   ;;  %v2785_v35 = vld [vmem:[%s3832_s4 + $0x20] sm:$0xff]  }
  0x23   : > { %v2786_v36 = vld [vmem:[%s3832_s4 + $0x18] sm:$0xff]   ;;  %v2787_v37 = vld [vmem:[%s3832_s4 + $0x10] sm:$0xff]   ;;  %v2788_v38 = vld [vmem:[%s3832_s4 + $0x8] sm:$0xff]  }
  0x24   : > { %v2789_v39 = vld [vmem:[%s3832_s4] sm:$0xff]   ;;  %v2792_v40 = vld [vmem:[%s3834_s6 + $0x74] ss:$8 sps:$4 sm:$0xff]   ;;  %v2790_v3 = vld [vmem:[%s3834_s6 + $0x70] ss:$8 sps:$4 sm:$0xff]  }
  0x25   : > { %2483 = vmatpush3.bf16.msra.mxu0 %v2749_v7  ;;  %2593 = vmatpush3.bf16.msra.mxu1 %v2784_v21  ;;  %v3313_v45 = vld [vmem:[%s3831_s3] ss:$0 sm:$0xff]  ;;  %v2795_v5 = vld [vmem:[%s3834_s6 + $0x64] ss:$8 sps:$4 sm:$0xff]  }
  0x26   : > { %2484 = vmatprep.subr.bf16.mxu0 %v2750_v8  ;;  %2594 = vmatprep.subr.bf16.mxu1 %v2785_v35 }
  0x29   : > { %2485 = vmatpush3.bf16.msra.mxu0 %v2751_v9  ;;  %2595 = vmatpush3.bf16.msra.mxu1 %v2785_v35 }
  0x2a   : > { %2486 = vmatprep.subr.bf16.mxu0 %v2752_v10  ;;  %2596 = vmatprep.subr.bf16.mxu1 %v2786_v36  ;;  %v2793_v10 = vld [vmem:[%s3834_s6 + $0x60] ss:$8 sps:$4 sm:$0xff]  }
  0x2d   : > { %2487 = vmatpush3.bf16.msra.mxu0 %v2753_v12  ;;  %2597 = vmatpush3.bf16.msra.mxu1 %v2786_v36  ;;  %v2798_v12 = vld [vmem:[%s3834_s6 + $0x54] ss:$8 sps:$4 sm:$0xff]  }
  0x2e   : > { %2488 = vmatprep.subr.bf16.mxu0 %v2754_v13  ;;  %2598 = vmatprep.subr.bf16.mxu1 %v2787_v37 }
  0x31   : > { %2489 = vmatpush3.bf16.msra.mxu0 %v2755_v14  ;;  %2599 = vmatpush3.bf16.msra.mxu1 %v2787_v37 }
  0x32   : > { %2490 = vmatprep.subr.bf16.mxu0 %v2756_v15  ;;  %2600 = vmatprep.subr.bf16.mxu1 %v2788_v38 }
  0x35   : > { %2491 = vmatpush3.bf16.msra.mxu0 %v2757_v16  ;;  %2601 = vmatpush3.bf16.msra.mxu1 %v2788_v38 }
  0x36   : > { %2602 = vmatprep.subr.bf16.mxu1 %v2789_v39 }
  0x38   : > { %802 = vmatmul.mubr.bf16.vlgmr.msra.gmra.mxu0 %v2758_v18  ;;  %v2796_v18 = vld [vmem:[%s3834_s6 + $0x50] ss:$8 sps:$4 sm:$0xff]  }
  0x39   : > { %809 = vmatprep.mubr.bf16.mxu0 %v2761_v20  ;;  %2603 = vmatpush3.bf16.msra.mxu1 %v2789_v39  ;;  %v2801_v20 = vld [vmem:[%s3834_s6 + $0x44] ss:$8 sps:$4 sm:$0xff]  }
  0x3a   : > { %1190 = vmatprep.subr.bf16.mxu1 %v2792_v40 }
  0x40   : > { %810 = vmatmul.mubr.bf16.gmra.mxu0 %v2763_v22 }
  0x41   : > { %817 = vmatprep.mubr.bf16.mxu0 %v2764_v23 }
  0x48   : > { %818 = vmatmul.mubr.bf16.gmra.mxu0 %v2766_v24 }
  0x49   : > { %825 = vmatprep.mubr.bf16.mxu0 %v2767_v25  ;;  %v2799_v25 = vld [vmem:[%s3834_s6 + $0x40] ss:$8 sps:$4 sm:$0xff]  }
  0x50   : > { %826 = vmatmul.mubr.bf16.gmra.mxu0 %v2769_v26 }
  0x51   : > { %833 = vmatprep.mubr.bf16.mxu0 %v2770_v27  ;;  %v2804_v27 = vld [vmem:[%s3834_s6 + $0x34] ss:$8 sps:$4 sm:$0xff]  }
  0x58   : > { %834 = vmatmul.mubr.bf16.gmra.mxu0 %v2772_v28 }
  0x59   : > { %841 = vmatprep.mubr.bf16.mxu0 %v2773_v29 }
  0x60   : > { %842 = vmatmul.mubr.bf16.gmra.mxu0 %v2775_v30 }
  0x61   : > { %849 = vmatprep.mubr.bf16.mxu0 %v2776_v31 }
  0x68   : > { %850 = vmatmul.mubr.bf16.gmra.mxu0 %v2778_v32 }
  0x69   : > { %857 = vmatprep.mubr.bf16.mxu0 %v2779_v33  ;;  %v2802_v33 = vld [vmem:[%s3834_s6 + $0x30] ss:$8 sps:$4 sm:$0xff]  }
  0x70   : > { %858 = vmatmul.mubr.bf16.gmra.mxu0 %v2781_v34 }
  0xf8   : > { %v2492_v41 = vpop.f32.mrf.mxu0 }
  0xfa   : > { %v2493_v42 = vpop.f32.mrf.mxu0 }
  0xfb   : > { %v2494_v43 = vadd.f32 %v2493_v42, %v2492_v41 }
  0xfc   : > { %v2495_v44 = vpop.f32.mrf.mxu0 }
  0xfd   : > { %v804_v48 = vadd.f32 %v2494_v43, %v3313_v45 }
  0xfe   : > { %v2496_v46 = vpop.f32.mrf.mxu0 }
  0xff   : > { %v2497_v47 = vadd.f32 %v2496_v46, %v2495_v44  ;;  %v866_v53 = vmax.f32 %v804_v48, 0.0 }
 0x100   : > { %v2498_v49 = vpop.f32.mrf.mxu0 }
 0x101   : > { %v807_v50 = vadd.f32 %v2497_v47, %v3313_v45 }
 0x102   : > { %v2499_v51 = vpop.f32.mrf.mxu0 }
 0x103   : > { %v2500_v52 = vadd.f32 %v2499_v51, %v2498_v49  ;;  %v867_v54 = vmax.f32 %v807_v50, 0.0 }
 0x104   : > { %v2501_v55 = vpop.f32.mrf.mxu0 }
 0x105   : > { %v882_v56 = vpack.c.bf16 %v867_v54, %v866_v53  ;;  %v812_v58 = vadd.f32 %v2500_v52, %v3313_v45 }
 0x106   : > { %v2502_v57 = vpop.f32.mrf.mxu0 }
 0x107   : > { %v2503_v59 = vadd.f32 %v2502_v57, %v2501_v55  ;;  %2604 = vmatprep.mubr.bf16.mxu1 %v882_v56  ;;  %v868_v63 = vmax.f32 %v812_v58, 0.0 }
 0x108   : > { %v2504_v60 = vpop.f32.mrf.mxu0 }
 0x109   : > { %v815_v61 = vadd.f32 %v2503_v59, %v3313_v45 }
 0x10a   : > { %v2505_v62 = vpop.f32.mrf.mxu0 }
 0x10b   : > { %v869_v0 = vmax.f32 %v815_v61, 0.0  ;;  %v2506_v1 = vadd.f32 %v2505_v62, %v2504_v60 }
 0x10c   : > { %v2507_v2 = vpop.f32.mrf.mxu0 }
 0x10d   : > { %v883_v4 = vpack.c.bf16 %v869_v0, %v868_v63  ;;  %v820_v7 = vadd.f32 %v2506_v1, %v3313_v45 }
 0x10e   : > { %v2508_v6 = vpop.f32.mrf.mxu0 }
 0x10f   : > { %v2509_v8 = vadd.f32 %v2508_v6, %v2507_v2  ;;  %2605 = vmatmul.mubr.bf16.vlgmr.msra.gmra.mxu1 %v883_v4  ;;  %v870_v14 = vmax.f32 %v820_v7, 0.0 }
 0x110   : > { %v2510_v9 = vpop.f32.mrf.mxu0  ;;  %1191 = vmatpush1.bf16.msra.mxu1 %v2790_v3 }
 0x111   : > { %v823_v11 = vadd.f32 %v2509_v8, %v3313_v45  ;;  %1192 = vmatprep.subr.bf16.mxu1 %v2795_v5 }
 0x112   : > { %v2511_v13 = vpop.f32.mrf.mxu0 }
 0x113   : > { %v871_v15 = vmax.f32 %v823_v11, 0.0  ;;  %v2512_v16 = vadd.f32 %v2511_v13, %v2510_v9  ;;  %v2805_v13 = vld [vmem:[%s3834_s6 + $0x20] ss:$8 sps:$4 sm:$0xff]  }
 0x114   : > { %v2513_v17 = vpop.f32.mrf.mxu0  ;;  %1193 = vmatpush1.bf16.msra.mxu1 %v2793_v10 }
 0x115   : > { %v884_v19 = vpack.c.bf16 %v871_v15, %v870_v14  ;;  %1194 = vmatprep.subr.bf16.mxu1 %v2798_v12  ;;  %v828_v22 = vadd.f32 %v2512_v16, %v3313_v45  ;;  %v2807_v12 = vld [vmem:[%s3834_s6 + $0x24] ss:$8 sps:$4 sm:$0xff]   ;;  %v2810_v14 = vld [vmem:[%s3834_s6 + $0x14] ss:$8 sps:$4 sm:$0xff]   ;;  %v2811_v16 = vld [vmem:[%s3834_s6] ss:$8 sps:$4 sm:$0xff]  }
 0x116   : > { %v2514_v21 = vpop.f32.mrf.mxu0  ;;  %v2813_v15 = vld [vmem:[%s3834_s6 + $0x4] ss:$8 sps:$4 sm:$0xff]  }
 0x117   : > { %v2515_v23 = vadd.f32 %v2514_v21, %v2513_v17  ;;  %2608 = vmatprep.mubr.bf16.mxu1 %v884_v19  ;;  %v872_v29 = vmax.f32 %v828_v22, 0.0  ;;  %v3076_v17 = vmov 0   ;;  %v2815_v19 = vld [vmem:[%s3836_s8 + $0x30] sm:$0xff]   ;;  %v3386_v22 = vld [vmem:[%s3833_s5] ss:$0 sm:$0xff] }
 0x118   : > { %v2516_v24 = vpop.f32.mrf.mxu0  ;;  %1195 = vmatpush1.bf16.msra.mxu1 %v2796_v18  ;;  %v2814_v18 = vld [vmem:[%s3836_s8 + $0x38] sm:$0xff]  }
 0x119   : > { %v831_v26 = vadd.f32 %v2515_v23, %v3313_v45  ;;  %1196 = vmatprep.subr.bf16.mxu1 %v2801_v20  ;;  %2620 = vmatprep.subr.bf16.mxu0 %v2814_v18 }
 0x11a   : > { %v2517_v28 = vpop.f32.mrf.mxu0  ;;  %2621 = vmatpush3.bf16.msra.mxu0 %v2814_v18  ;;  %v2820_v18 = vld [vmem:[%s3836_s8 + $0x8] sm:$0xff]  }
 0x11b   : > { %v873_v30 = vmax.f32 %v831_v26, 0.0  ;;  %v2518_v31 = vadd.f32 %v2517_v28, %v2516_v24  ;;  %2622 = vmatprep.subr.bf16.mxu0 %v2815_v19 }
 0x11c   : > { %v2519_v32 = vpop.f32.mrf.mxu0  ;;  %1197 = vmatpush1.bf16.msra.mxu1 %v2799_v25 }
 0x11d   : > { %v885_v34 = vpack.c.bf16 %v873_v30, %v872_v29  ;;  %1198 = vmatprep.subr.bf16.mxu1 %v2804_v27  ;;  %v836_v36 = vadd.f32 %v2518_v31, %v3313_v45 }
 0x11e   : > { %v2520_v35 = vpop.f32.mrf.mxu0  ;;  %2623 = vmatpush3.bf16.msra.mxu0 %v2815_v19  ;;  %v2821_v19 = vld [vmem:[%s3836_s8] sm:$0xff]  }
 0x11f   : > { %v2521_v37 = vadd.f32 %v2520_v35, %v2519_v32  ;;  %2609 = vmatmul.mubr.bf16.gmra.mxu1 %v885_v34  ;;  %v874_v41 = vmax.f32 %v836_v36, 0.0 }
 0x120   : > { %v2522_v38 = vpop.f32.mrf.mxu0  ;;  %1199 = vmatpush1.bf16.msra.mxu1 %v2802_v33 }
 0x121   : > { %v839_v39 = vadd.f32 %v2521_v37, %v3313_v45  ;;  %1200 = vmatprep.subr.bf16.mxu1 %v2807_v12 }
 0x122   : > { %v2523_v40 = vpop.f32.mrf.mxu0 }
 0x123   : > { %v875_v42 = vmax.f32 %v839_v39, 0.0  ;;  %v2524_v43 = vadd.f32 %v2523_v40, %v2522_v38 }
 0x124   : > { %v2525_v44 = vpop.f32.mrf.mxu0  ;;  %1201 = vmatpush1.bf16.msra.mxu1 %v2805_v13 }
 0x125   : > { %v886_v46 = vpack.c.bf16 %v875_v42, %v874_v41  ;;  %v844_v48 = vadd.f32 %v2524_v43, %v3313_v45  ;;  %1202 = vmatprep.subr.bf16.mxu1 %v2810_v14  ;;  %v2816_v14 = vld [vmem:[%s3836_s8 + $0x28] sm:$0xff]  }
 0x126   : > { %v2526_v47 = vpop.f32.mrf.mxu0  ;;  %2624 = vmatprep.subr.bf16.mxu0 %v2816_v14 }
 0x127   : > { %v2527_v49 = vadd.f32 %v2526_v47, %v2525_v44  ;;  %2612 = vmatprep.mubr.bf16.mxu1 %v886_v46  ;;  %v876_v53 = vmax.f32 %v844_v48, 0.0  ;;  %2625 = vmatpush3.bf16.msra.mxu0 %v2816_v14 }
 0x128   : > { %v2528_v50 = vpop.f32.mrf.mxu0 }
 0x129   : > { %v847_v51 = vadd.f32 %v2527_v49, %v3313_v45 }
 0x12a   : > { %v2529_v52 = vpop.f32.mrf.mxu0 }
 0x12b   : > { %v877_v54 = vmax.f32 %v847_v51, 0.0  ;;  %v2530_v55 = vadd.f32 %v2529_v52, %v2528_v50 }
 0x12c   : > { %v2531_v56 = vpop.f32.mrf.mxu0 }
 0x12d   : > { %v887_v57 = vpack.c.bf16 %v877_v54, %v876_v53  ;;  %v852_v59 = vadd.f32 %v2530_v55, %v3313_v45 }
 0x12e   : > { %v2532_v58 = vpop.f32.mrf.mxu0 }
 0x12f   : > { %v2533_v60 = vadd.f32 %v2532_v58, %v2531_v56  ;;  %2613 = vmatmul.mubr.bf16.gmra.mxu1 %v887_v57  ;;  %v878_v0 = vmax.f32 %v852_v59, 0.0 }
 0x130   : > { %v2534_v61 = vpop.f32.mrf.mxu0 }
 0x131   : > { %v855_v62 = vadd.f32 %v2533_v60, %v3313_v45 }
 0x132   : > { %v2535_v63 = vpop.f32.mrf.mxu0 }
 0x133   : > { %v879_v1 = vmax.f32 %v855_v62, 0.0  ;;  %v2536_v2 = vadd.f32 %v2535_v63, %v2534_v61 }
 0x134   : > { %v2537_v3 = vpop.f32.mrf.mxu0 }
 0x135   : > { %v888_v4 = vpack.c.bf16 %v879_v1, %v878_v0  ;;  %v860_v6 = vadd.f32 %v2536_v2, %v3313_v45 }
 0x136   : > { %v2538_v5 = vpop.f32.mrf.mxu0 }
 0x137   : > { %v2539_v7 = vadd.f32 %v2538_v5, %v2537_v3  ;;  %2616 = vmatprep.mubr.bf16.mxu1 %v888_v4  ;;  %v880_v9 = vmax.f32 %v860_v6, 0.0 }
 0x139   : > { %v863_v8 = vadd.f32 %v2539_v7, %v3313_v45  ;;  %v2808_v45 = vld [vmem:[%s3834_s6 + $0x10] ss:$8 sps:$4 sm:$0xff]  }
 0x13a   : > { %1203 = vmatpush1.bf16.msra.mxu1 %v2808_v45  ;;  %v2817_v45 = vld [vmem:[%s3836_s8 + $0x20] sm:$0xff]  }
 0x13b   : > { %v881_v10 = vmax.f32 %v863_v8, 0.0  ;;  %1204 = vmatprep.subr.bf16.mxu1 %v2813_v15  ;;  %2626 = vmatprep.subr.bf16.mxu0 %v2817_v45  ;;  %v2818_v15 = vld [vmem:[%s3836_s8 + $0x18] sm:$0xff]  }
 0x13c   : > { %2627 = vmatpush3.bf16.msra.mxu0 %v2817_v45 }
 0x13d   : > { %v889_v11 = vpack.c.bf16 %v881_v10, %v880_v9  ;;  %2628 = vmatprep.subr.bf16.mxu0 %v2818_v15 }
 0x13e   : > { %1205 = vmatpush1.bf16.msra.mxu1 %v2811_v16  ;;  %v2819_v16 = vld [vmem:[%s3836_s8 + $0x10] sm:$0xff]  }
 0x13f   : > { %2617 = vmatmul.mubr.bf16.gmra.mxu1 %v889_v11 }
 0x140   : > { %1222 = vmatprep.mubr.bf16.mxu1 %v3076_v17  ;;  %2629 = vmatpush3.bf16.msra.mxu0 %v2818_v15  ;;  %v1353_v15 = vld [vmem:[%s3493_s29 + $0x10] sm:$0xff] }
 0x141   : > { %2630 = vmatprep.subr.bf16.mxu0 %v2819_v16 }
 0x144   : > { %2631 = vmatpush3.bf16.msra.mxu0 %v2819_v16 }
 0x145   : > { %2632 = vmatprep.subr.bf16.mxu0 %v2820_v18 }
 0x148   : > { %2633 = vmatpush3.bf16.msra.mxu0 %v2820_v18 }
 0x149   : > { %2634 = vmatprep.subr.bf16.mxu0 %v2821_v19 }
 0x14c   : > { %2635 = vmatpush3.bf16.msra.mxu0 %v2821_v19 }
 0x1cf   : > { %v2606_v20 = vpop.f32.mrf.mxu1 }
 0x1d0   : > { %v1004_v31 = vadd.f32 %v2606_v20, %v3386_v22  ;;  %v3433_v20 = vld [vmem:[%s3838_s10 + $0x38] sm:$0xff]  }
 0x1d1   : > { %v995_v21 = vpop.f32.mrf.mxu1  ;;  %2652 = vmatprep.subr.bf16.mxu0 %v3433_v20 }
 0x1d2   : > { %v996_v24 = vadd.f32 %v3386_v22, %v995_v21  ;;  %v1060_v34 = vmax.f32 %v1004_v31, 0.0  ;;  %v1100_v21 = vlaneseq }
 0x1d3   : > { %v2607_v23 = vpop.f32.mrf.mxu1 }
 0x1d4   : > { %v1058_v27 = vmax.f32 %v996_v24, 0.0  ;;  %v1007_v29 = vadd.f32 %v2607_v23, %v3386_v22  ;;  %v1098_v24 = vld [vmem:[%s3835_s7] sm:$0x3] }
 0x1d5   : > { %v998_v25 = vpop.f32.mrf.mxu1 }
 0x1d6   : > { %v999_v26 = vadd.f32 %v3386_v22, %v998_v25  ;;  %v1061_v32 = vmax.f32 %v1007_v29, 0.0 }
 0x1d8   : > { %v1059_v28 = vmax.f32 %v999_v26, 0.0  ;;  %v1075_v36 = vpack.c.bf16 %v1061_v32, %v1060_v34 }
 0x1da   : > { %v1074_v30 = vpack.c.bf16 %v1059_v28, %v1058_v27 }
 0x1dc   : > { %1223 = vmatmul.mubr.bf16.vlgmr.msra.gmra.mxu1 %v1074_v30 }
 0x1dd   : > { %1232 = vmatprep.mubr.bf16.mxu1 %v3076_v17 }
 0x1df   : > { %v2610_v33 = vpop.f32.mrf.mxu1 }
 0x1e0   : > { %v1020_v46 = vadd.f32 %v2610_v33, %v3386_v22 }
 0x1e1   : > { %v1011_v35 = vpop.f32.mrf.mxu1 }
 0x1e2   : > { %v1012_v38 = vadd.f32 %v3386_v22, %v1011_v35  ;;  %v1064_v49 = vmax.f32 %v1020_v46, 0.0 }
 0x1e3   : > { %v2611_v37 = vpop.f32.mrf.mxu1 }
 0x1e4   : > { %1233 = vmatmul.mubr.bf16.gmra.mxu1 %v1075_v36  ;;  %v1062_v41 = vmax.f32 %v1012_v38, 0.0  ;;  %v1023_v43 = vadd.f32 %v2611_v37, %v3386_v22 }
 0x1e5   : > { %v1014_v39 = vpop.f32.mrf.mxu1  ;;  %1242 = vmatprep.mubr.bf16.mxu1 %v3076_v17 }
 0x1e6   : > { %v1015_v40 = vadd.f32 %v3386_v22, %v1014_v39  ;;  %v1065_v47 = vmax.f32 %v1023_v43, 0.0 }
 0x1e8   : > { %v1063_v42 = vmax.f32 %v1015_v40, 0.0  ;;  %v1077_v51 = vpack.c.bf16 %v1065_v47, %v1064_v49 }
 0x1ea   : > { %v1076_v44 = vpack.c.bf16 %v1063_v42, %v1062_v41 }
 0x1ec   : > { %1243 = vmatmul.mubr.bf16.gmra.mxu1 %v1076_v44 }
 0x1ed   : > { %1252 = vmatprep.mubr.bf16.mxu1 %v3076_v17 }
 0x1ef   : > { %v2614_v48 = vpop.f32.mrf.mxu1 }
 0x1f0   : > { %v1036_v60 = vadd.f32 %v2614_v48, %v3386_v22 }
 0x1f1   : > { %v1027_v50 = vpop.f32.mrf.mxu1 }
 0x1f2   : > { %v1028_v53 = vadd.f32 %v3386_v22, %v1027_v50  ;;  %v1068_v63 = vmax.f32 %v1036_v60, 0.0  ;;  %v1351_v60 = vld [vmem:[%s3493_s29] sm:$0xff] }
 0x1f3   : > { %v2615_v52 = vpop.f32.mrf.mxu1 }
 0x1f4   : > { %1253 = vmatmul.mubr.bf16.gmra.mxu1 %v1077_v51  ;;  %v1066_v56 = vmax.f32 %v1028_v53, 0.0  ;;  %v1039_v58 = vadd.f32 %v2615_v52, %v3386_v22 }
 0x1f5   : > { %v1030_v54 = vpop.f32.mrf.mxu1  ;;  %1262 = vmatprep.mubr.bf16.mxu1 %v3076_v17 }
 0x1f6   : > { %v1031_v55 = vadd.f32 %v3386_v22, %v1030_v54  ;;  %v1069_v61 = vmax.f32 %v1039_v58, 0.0 }
 0x1f8   : > { %v1067_v57 = vmax.f32 %v1031_v55, 0.0  ;;  %v1079_v1 = vpack.c.bf16 %v1069_v61, %v1068_v63 }
 0x1fa   : > { %v1078_v59 = vpack.c.bf16 %v1067_v57, %v1066_v56 }
 0x1fc   : > { %1263 = vmatmul.mubr.bf16.gmra.mxu1 %v1078_v59 }
 0x1fd   : > { %1272 = vmatprep.mubr.bf16.mxu1 %v3076_v17 }
 0x1ff   : > { %v2618_v62 = vpop.f32.mrf.mxu1 }
 0x200   : > { %v1052_v10 = vadd.f32 %v2618_v62, %v3386_v22 }
 0x201   : > { %v1043_v0 = vpop.f32.mrf.mxu1 }
 0x202   : > { %v1044_v3 = vadd.f32 %v3386_v22, %v1043_v0  ;;  %v1072_v12 = vmax.f32 %v1052_v10, 0.0 }
 0x203   : > { %v2619_v2 = vpop.f32.mrf.mxu1 }
 0x204   : > { %1273 = vmatmul.mubr.bf16.gmra.mxu1 %v1079_v1  ;;  %v1070_v6 = vmax.f32 %v1044_v3, 0.0  ;;  %v1055_v8 = vadd.f32 %v2619_v2, %v3386_v22  ;;  %v1352_v2 = vld [vmem:[%s3493_s29 + $0x8] sm:$0xff] }
 0x205   : > { %v1046_v4 = vpop.f32.mrf.mxu1  ;;  %1282 = vmatprep.mubr.bf16.mxu1 %v3076_v17 }
 0x206   : > { %v1047_v5 = vadd.f32 %v3386_v22, %v1046_v4  ;;  %v1073_v11 = vmax.f32 %v1055_v8, 0.0  ;;  %v3436_v22 = vshrl.u32 %v1100_v21, 7 }
 0x208   : > { %v1071_v7 = vmax.f32 %v1047_v5, 0.0  ;;  %v1081_v13 = vpack.c.bf16 %v1073_v11, %v1072_v12  ;;  %v1102_v23 = vsub.s32 0, %v3436_v22  ;;  %v1106_v25 = vsub.s32 1, %v3436_v22 }
 0x20a   : > { %v1080_v9 = vpack.c.bf16 %v1071_v7, %v1070_v6  ;;  %v3446_v26 = vrot.slane %v1098_v24, %v1102_v23  ;;  %v3450_v27 = vrot.slane %v1098_v24, %v1106_v25 }
 0x20c   : > { %1283 = vmatmul.mubr.bf16.gmra.mxu1 %v1080_v9 }
 0x20d   : > { %1292 = vmatprep.mubr.bf16.mxu1 %v3076_v17 }
 0x214   : > { %1293 = vmatmul.mubr.bf16.gmra.mxu1 %v1081_v13 }
 0x215   : > { %1951 = vmatprep.mubr.bf16.mxu1 %v3076_v17 }
 0x29c   : > { %v1224_v28 = vpop.f32.mrf.mxu1 }
 0x29d   : > { %v3458_v29 = vadd.f32 %v1224_v28, %v3446_v26 }
 0x29e   : > { %v1226_v30 = vpop.f32.mrf.mxu1 }
 0x29f   : > { %2204 = vst [vmem:[%s3455_s24] sm:$0xff] %v3458_v29  ;;  %v1227_v31 = vadd.f32 %v1226_v30, %v3450_v27 }
 0x2a0   : > { %v1228_v32 = vpop.f32.mrf.mxu1 }
 0x2a1   : > { %v1303_v33 = vmul.f32 0.5, %v1227_v31  ;;  %2205 = vst [vmem:[%s3455_s24 + $0x8] sm:$0xff] %v1227_v31  ;;  %v3465_v34 = vadd.f32 %v1228_v32, %v3446_v26 }
 0x2a2   : > { %v1230_v35 = vpop.f32.mrf.mxu1 }
 0x2a3   : > { %v1319_v36 = vmul.f32 1.442695, %v1303_v33  ;;  %2206 = vst [vmem:[%s3455_s24 + $0x10] sm:$0xff] %v3465_v34  ;;  %v1231_v37 = vadd.f32 %v1230_v35, %v3450_v27 }
 0x2a4   : > { %v1234_v38 = vpop.f32.mrf.mxu1 }
 0x2a5   : > { %2854 = vpow2.f32 %v1319_v36  ;;  %v1304_v39 = vmul.f32 0.5, %v1231_v37  ;;  %2207 = vst [vmem:[%s3455_s24 + $0x18] sm:$0xff] %v1231_v37  ;;  %v3472_v40 = vadd.f32 %v1234_v38, %v3446_v26 }
 0x2a6   : > { %v1236_v41 = vpop.f32.mrf.mxu1 }
 0x2a7   : > { %v1321_v42 = vmul.f32 1.442695, %v1304_v39  ;;  %2208 = vst [vmem:[%s3455_s24 + $0x20] sm:$0xff] %v3472_v40  ;;  %v1237_v43 = vadd.f32 %v1236_v41, %v3450_v27 }
 0x2a8   : > { %v1238_v44 = vpop.f32.mrf.mxu1 }
 0x2a9   : > { %2856 = vpow2.f32 %v1321_v42  ;;  %v1305_v46 = vmul.f32 0.5, %v1237_v43  ;;  %2209 = vst [vmem:[%s3455_s24 + $0x28] sm:$0xff] %v1237_v43  ;;  %v3479_v47 = vadd.f32 %v1238_v44, %v3446_v26  ;;  %v1355_v44 = vld [vmem:[%s3493_s29 + $0x20] sm:$0xff] }
 0x2aa   : > { %v1240_v48 = vpop.f32.mrf.mxu1 }
 0x2ab   : > { %v1323_v49 = vmul.f32 1.442695, %v1305_v46  ;;  %2210 = vst [vmem:[%s3455_s24 + $0x30] sm:$0xff] %v3479_v47  ;;  %v1241_v50 = vadd.f32 %v1240_v48, %v3450_v27 }
 0x2ac   : > { %v1244_v51 = vpop.f32.mrf.mxu1 }
 0x2ad   : > { %2858 = vpow2.f32 %v1323_v49  ;;  %v1306_v52 = vmul.f32 0.5, %v1241_v50  ;;  %2211 = vst [vmem:[%s3455_s24 + $0x38] sm:$0xff] %v1241_v50  ;;  %v3486_v53 = vadd.f32 %v1244_v51, %v3446_v26 }
 0x2ae   : > { %v1246_v54 = vpop.f32.mrf.mxu1 }
 0x2af   : > { %v1325_v55 = vmul.f32 1.442695, %v1306_v52  ;;  %2212 = vst [vmem:[%s3455_s24 + $0x40] sm:$0xff] %v3486_v53  ;;  %v1247_v56 = vadd.f32 %v1246_v54, %v3450_v27  ;;  %v1356_v54 = vld [vmem:[%s3493_s29 + $0x28] sm:$0xff] }
 0x2b0   : > { %v1248_v57 = vpop.f32.mrf.mxu1 }
 0x2b1   : > { %2860 = vpow2.f32 %v1325_v55  ;;  %v1307_v58 = vmul.f32 0.5, %v1247_v56  ;;  %2213 = vst [vmem:[%s3455_s24 + $0x48] sm:$0xff] %v1247_v56  ;;  %v3500_v59 = vadd.f32 %v1248_v57, %v3446_v26 }
 0x2b2   : > { %v2855_v61 = vpop.eup %2854  ;;  %v1250_v62 = vpop.f32.mrf.mxu1 }
 0x2b3   : > { %v1327_v63 = vmul.f32 1.442695, %v1307_v58  ;;  %2214 = vst [vmem:[%s3455_s24 + $0x50] sm:$0xff] %v3500_v59  ;;  %v1251_v0 = vadd.f32 %v1250_v62, %v3450_v27  ;;  %v1367_v3 = vmul.f32 %v2855_v61, %v1351_v60 }
 0x2b4   : > { %v1254_v1 = vpop.f32.mrf.mxu1 }
 0x2b5   : > { %2862 = vpow2.f32 %v1327_v63  ;;  %v1308_v4 = vmul.f32 0.5, %v1251_v0  ;;  %2215 = vst [vmem:[%s3455_s24 + $0x58] sm:$0xff] %v1251_v0  ;;  %v3509_v5 = vadd.f32 %v1254_v1, %v3446_v26  ;;  %v1383_v12 = vadd.f32 %v1367_v3, %v3458_v29  ;;  %v1354_v29 = vld [vmem:[%s3493_s29 + $0x18] sm:$0xff]  ;;  %v2824_v63 = vld [vmem:[%s3838_s10 + $0x28] sm:$0xff]  }
 0x2b6   : > { %v2857_v6 = vpop.eup %2856  ;;  %v1256_v7 = vpop.f32.mrf.mxu1 }
 0x2b7   : > { %v1329_v8 = vmul.f32 1.442695, %v1308_v4  ;;  %2216 = vst [vmem:[%s3455_s24 + $0x60] sm:$0xff] %v3509_v5  ;;  %v1257_v9 = vadd.f32 %v1256_v7, %v3450_v27  ;;  %v1368_v10 = vmul.f32 %v2857_v6, %v1352_v2  ;;  %v1357_v4 = vld [vmem:[%s3493_s29 + $0x30] sm:$0xff] }
 0x2b8   : > { %v1258_v11 = vpop.f32.mrf.mxu1 }
 0x2b9   : > { %2864 = vpow2.f32 %v1329_v8  ;;  %v1309_v13 = vmul.f32 0.5, %v1257_v9  ;;  %2217 = vst [vmem:[%s3455_s24 + $0x68] sm:$0xff] %v1257_v9  ;;  %v3517_v14 = vadd.f32 %v1258_v11, %v3446_v26  ;;  %v1384_v45 = vadd.f32 %v1368_v10, %v3465_v34  ;;  %v2825_v10 = vld [vmem:[%s3838_s10 + $0x20] sm:$0xff]  }
 0x2ba   : > { %v2859_v16 = vpop.eup %2858  ;;  %v1260_v18 = vpop.f32.mrf.mxu1 }
 0x2bb   : > { %v1331_v19 = vmul.f32 1.442695, %v1309_v13  ;;  %2218 = vst [vmem:[%s3455_s24 + $0x70] sm:$0xff] %v3517_v14  ;;  %v1261_v21 = vadd.f32 %v1260_v18, %v3450_v27  ;;  %v1399_v24 = vpack.c.bf16 %v1384_v45, %v1383_v12  ;;  %v1369_v30 = vmul.f32 %v2859_v16, %v1353_v15  ;;  %v1358_v12 = vld [vmem:[%s3493_s29 + $0x38] sm:$0xff] }
 0x2bc   : > { %v1264_v28 = vpop.f32.mrf.mxu1 }
 0x2bd   : > { %2866 = vpow2.f32 %v1331_v19  ;;  %v1310_v31 = vmul.f32 0.5, %v1261_v21  ;;  %2219 = vst [vmem:[%s3455_s24 + $0x78] sm:$0xff] %v1261_v21  ;;  %v3527_v32 = vadd.f32 %v1264_v28, %v3446_v26  ;;  %2636 = vmatprep.mubr.bf16.mxu0 %v1399_v24  ;;  %v1385_v39 = vadd.f32 %v1369_v30, %v3472_v40  ;;  %v2823_v40 = vld [vmem:[%s3838_s10 + $0x30] sm:$0xff]   ;;  %v2826_v24 = vld [vmem:[%s3838_s10 + $0x18] sm:$0xff]  }
 0x2be   : > { %v2861_v33 = vpop.eup %2860  ;;  %v1266_v34 = vpop.f32.mrf.mxu1 }
 0x2bf   : > { %v1333_v35 = vmul.f32 1.442695, %v1310_v31  ;;  %2220 = vst [vmem:[%s3455_s24 + $0x80] sm:$0xff] %v3527_v32  ;;  %v1267_v36 = vadd.f32 %v1266_v34, %v3450_v27  ;;  %v1370_v37 = vmul.f32 %v2861_v33, %v1354_v29  ;;  %v1359_v34 = vld [vmem:[%s3493_s29 + $0x40] sm:$0xff] }
 0x2c0   : > { %v1268_v38 = vpop.f32.mrf.mxu1 }
 0x2c1   : > { %2868 = vpow2.f32 %v1333_v35  ;;  %v1311_v41 = vmul.f32 0.5, %v1267_v36  ;;  %2221 = vst [vmem:[%s3455_s24 + $0x88] sm:$0xff] %v1267_v36  ;;  %v3535_v42 = vadd.f32 %v1268_v38, %v3446_v26  ;;  %v1386_v43 = vadd.f32 %v1370_v37, %v3479_v47 }
 0x2c2   : > { %v2863_v46 = vpop.eup %2862  ;;  %v1270_v48 = vpop.f32.mrf.mxu1 }
 0x2c3   : > { %v1335_v49 = vmul.f32 1.442695, %v1311_v41  ;;  %2222 = vst [vmem:[%s3455_s24 + $0x90] sm:$0xff] %v3535_v42  ;;  %v1271_v50 = vadd.f32 %v1270_v48, %v3450_v27  ;;  %v1400_v51 = vpack.c.bf16 %v1386_v43, %v1385_v39  ;;  %v1371_v55 = vmul.f32 %v2863_v46, %v1355_v44  ;;  %v1360_v41 = vld [vmem:[%s3493_s29 + $0x48] sm:$0xff] }
 0x2c4   : > { %v1274_v52 = vpop.f32.mrf.mxu1 }
 0x2c5   : > { %2870 = vpow2.f32 %v1335_v49  ;;  %v1312_v56 = vmul.f32 0.5, %v1271_v50  ;;  %2223 = vst [vmem:[%s3455_s24 + $0x98] sm:$0xff] %v1271_v50  ;;  %v3548_v47 = vadd.f32 %v1274_v52, %v3446_v26  ;;  %2637 = vmatmul.mubr.bf16.vlgmr.msra.gmra.mxu0 %v1400_v51  ;;  %v1387_v1 = vadd.f32 %v1371_v55, %v3486_v53 }
 0x2c6   : > { %v2865_v57 = vpop.eup %2864  ;;  %v1276_v58 = vpop.f32.mrf.mxu1  ;;  %2653 = vmatpush3.bf16.msra.mxu0 %v3433_v20 }
 0x2c7   : > { %v1337_v60 = vmul.f32 1.442695, %v1312_v56  ;;  %2224 = vst [vmem:[%s3455_s24 + $0xa0] sm:$0xff] %v3548_v47  ;;  %v1277_v61 = vadd.f32 %v1276_v58, %v3450_v27  ;;  %v1372_v62 = vmul.f32 %v2865_v57, %v1356_v54  ;;  %2654 = vmatprep.subr.bf16.mxu0 %v2823_v40 }
 0x2c8   : > { %v1278_v0 = vpop.f32.mrf.mxu1 }
 0x2c9   : > { %2872 = vpow2.f32 %v1337_v60  ;;  %v1313_v2 = vmul.f32 0.5, %v1277_v61  ;;  %2225 = vst [vmem:[%s3455_s24 + $0xa8] sm:$0xff] %v1277_v61  ;;  %v3560_v20 = vadd.f32 %v1278_v0, %v3446_v26  ;;  %v1388_v3 = vadd.f32 %v1372_v62, %v3500_v59  ;;  %v1361_v60 = vld [vmem:[%s3493_s29 + $0x50] sm:$0xff]  ;;  %v1362_v0 = vld [vmem:[%s3493_s29 + $0x58] sm:$0xff] }
 0x2ca   : > { %v2867_v6 = vpop.eup %2866  ;;  %v1280_v7 = vpop.f32.mrf.mxu1  ;;  %2655 = vmatpush3.bf16.msra.mxu0 %v2823_v40 }
 0x2cb   : > { %v1339_v8 = vmul.f32 1.442695, %v1313_v2  ;;  %2226 = vst [vmem:[%s3455_s24 + $0xb0] sm:$0xff] %v3560_v20  ;;  %v1281_v9 = vadd.f32 %v1280_v7, %v3450_v27  ;;  %v1401_v53 = vpack.c.bf16 %v1388_v3, %v1387_v1  ;;  %2656 = vmatprep.subr.bf16.mxu0 %v2824_v63  ;;  %v1373_v59 = vmul.f32 %v2867_v6, %v1357_v4 }
 0x2cc   : > { %v1284_v11 = vpop.f32.mrf.mxu1 }
 0x2cd   : > { %2874 = vpow2.f32 %v1339_v8  ;;  %v1314_v13 = vmul.f32 0.5, %v1281_v9  ;;  %2227 = vst [vmem:[%s3455_s24 + $0xb8] sm:$0xff] %v1281_v9  ;;  %v3573_v45 = vadd.f32 %v1284_v11, %v3446_v26  ;;  %2640 = vmatprep.mubr.bf16.mxu0 %v1401_v53  ;;  %v1389_v29 = vadd.f32 %v1373_v59, %v3509_v5  ;;  %v1364_v8 = vld [vmem:[%s3493_s29 + $0x68] sm:$0xff] }
 0x2ce   : > { %v2869_v15 = vpop.eup %2868  ;;  %v1286_v16 = vpop.f32.mrf.mxu1  ;;  %2657 = vmatpush3.bf16.msra.mxu0 %v2824_v63 }
 0x2cf   : > { %v1341_v18 = vmul.f32 1.442695, %v1314_v13  ;;  %2228 = vst [vmem:[%s3455_s24 + $0xc0] sm:$0xff] %v3573_v45  ;;  %v1287_v19 = vadd.f32 %v1286_v16, %v3450_v27  ;;  %v1374_v21 = vmul.f32 %v2869_v15, %v1358_v12  ;;  %2658 = vmatprep.subr.bf16.mxu0 %v2825_v10  ;;  %v1365_v13 = vld [vmem:[%s3493_s29 + $0x70] sm:$0xff]  ;;  %v1366_v16 = vld [vmem:[%s3493_s29 + $0x78] sm:$0xff] }
 0x2d0   : > { %v1288_v28 = vpop.f32.mrf.mxu1 }
 0x2d1   : > { %2876 = vpow2.f32 %v1341_v18  ;;  %v1315_v30 = vmul.f32 0.5, %v1287_v19  ;;  %2229 = vst [vmem:[%s3455_s24 + $0xc8] sm:$0xff] %v1287_v19  ;;  %v1289_v31 = vadd.f32 %v1288_v28, %v3446_v26  ;;  %v1390_v33 = vadd.f32 %v1374_v21, %v3517_v14  ;;  %v2827_v28 = vld [vmem:[%s3838_s10 + $0x10] sm:$0xff]  }
 0x2d2   : > { %v2871_v35 = vpop.eup %2870  ;;  %v1290_v36 = vpop.f32.mrf.mxu1  ;;  %2659 = vmatpush3.bf16.msra.mxu0 %v2825_v10 }
 0x2d3   : > { %v1343_v37 = vmul.f32 1.442695, %v1315_v30  ;;  %2230 = vst [vmem:[%s3455_s24 + $0xd0] sm:$0xff] %v1289_v31  ;;  %v1291_v38 = vadd.f32 %v1290_v36, %v3450_v27  ;;  %v1402_v39 = vpack.c.bf16 %v1390_v33, %v1389_v29  ;;  %2660 = vmatprep.subr.bf16.mxu0 %v2826_v24  ;;  %v1375_v43 = vmul.f32 %v2871_v35, %v1359_v34  ;;  %v2829_v29 = vld [vmem:[%s3838_s10] sm:$0xff]   ;;  %v2832_v30 = vld [vmem:[%s3840_s12 + $0x74] ss:$8 sps:$4 sm:$0xff]  }
 0x2d4   : > { %v1294_v5 = vpop.f32.mrf.mxu1  ;;  %2684 = vmatprep.subr.bf16.mxu1 %v2832_v30  ;;  %v2835_v33 = vld [vmem:[%s3840_s12 + $0x64] ss:$8 sps:$4 sm:$0xff]   ;;  %v2833_v34 = vld [vmem:[%s3840_s12 + $0x60] ss:$8 sps:$4 sm:$0xff]   ;;  %v2838_v35 = vld [vmem:[%s3840_s12 + $0x54] ss:$8 sps:$4 sm:$0xff]  }
 0x2d5   : > { %2878 = vpow2.f32 %v1343_v37  ;;  %v1316_v44 = vmul.f32 0.5, %v1291_v38  ;;  %2231 = vst [vmem:[%s3455_s24 + $0xd8] sm:$0xff] %v1291_v38  ;;  %v1295_v14 = vadd.f32 %v1294_v5, %v3446_v26  ;;  %2641 = vmatmul.mubr.bf16.gmra.mxu0 %v1402_v39  ;;  %v1391_v52 = vadd.f32 %v1375_v43, %v3527_v32  ;;  %v2836_v36 = vld [vmem:[%s3840_s12 + $0x50] ss:$8 sps:$4 sm:$0xff]   ;;  %v2841_v37 = vld [vmem:[%s3840_s12 + $0x44] ss:$8 sps:$4 sm:$0xff]  }
 0x2d6   : > { %v2873_v46 = vpop.eup %2872  ;;  %v1296_v48 = vpop.f32.mrf.mxu1  ;;  %2661 = vmatpush3.bf16.msra.mxu0 %v2826_v24  ;;  %v2839_v38 = vld [vmem:[%s3840_s12 + $0x40] ss:$8 sps:$4 sm:$0xff]   ;;  %v2844_v39 = vld [vmem:[%s3840_s12 + $0x34] ss:$8 sps:$4 sm:$0xff]   ;;  %v2842_v5 = vld [vmem:[%s3840_s12 + $0x30] ss:$8 sps:$4 sm:$0xff]  }
 0x2d7   : > { %v1345_v49 = vmul.f32 1.442695, %v1316_v44  ;;  %2232 = vst [vmem:[%s3455_s24 + $0xe0] sm:$0xff] %v1295_v14  ;;  %v1297_v50 = vadd.f32 %v1296_v48, %v3450_v27  ;;  %v1376_v51 = vmul.f32 %v2873_v46, %v1360_v41  ;;  %2662 = vmatprep.subr.bf16.mxu0 %v2827_v28  ;;  %v3651_v44 = vld [vmem:[%s3837_s9] ss:$0 sm:$0xff] }
 0x2d8   : > { %v1298_v40 = vpop.f32.mrf.mxu1 }
 0x2d9   : > { %2880 = vpow2.f32 %v1345_v49  ;;  %v1317_v54 = vmul.f32 0.5, %v1297_v50  ;;  %2233 = vst [vmem:[%s3455_s24 + $0xe8] sm:$0xff] %v1297_v50  ;;  %v1299_v55 = vadd.f32 %v1298_v40, %v3446_v26  ;;  %v1392_v56 = vadd.f32 %v1376_v51, %v3535_v42 }
 0x2da   : > { %v2875_v57 = vpop.eup %2874  ;;  %v1300_v58 = vpop.f32.mrf.mxu1  ;;  %2663 = vmatpush3.bf16.msra.mxu0 %v2827_v28 }
 0x2db   : > { %v1347_v61 = vmul.f32 1.442695, %v1317_v54  ;;  %2234 = vst [vmem:[%s3455_s24 + $0xf0] sm:$0xff] %v1299_v55  ;;  %v1301_v62 = vadd.f32 %v1300_v58, %v3450_v27  ;;  %v1403_v63 = vpack.c.bf16 %v1392_v56, %v1391_v52  ;;  %v1377_v1 = vmul.f32 %v2875_v57, %v1361_v60  ;;  %v1363_v27 = vld [vmem:[%s3493_s29 + $0x60] sm:$0xff]  ;;  %s3788_s29 = scalar_lea.sflag [#allocation3], %s505_s26 }
 0x2dd   : > { %2882 = vpow2.f32 %v1347_v61  ;;  %v1318_v32 = vmul.f32 0.5, %v1301_v62  ;;  %2235 = vst [vmem:[%s3455_s24 + $0xf8] sm:$0xff] %v1301_v62  ;;  %2644 = vmatprep.mubr.bf16.mxu0 %v1403_v63  ;;  %v1393_v3 = vadd.f32 %v1377_v1, %v3548_v47  ;;  %s2257_s24 = sshll.u32 %s3729_s20, 4  ;;  %s3782_s24 = int_to_ptr.vmem [resolvable:$true] %s2257_s24 }
 0x2de   : > { %v2877_v2 = vpop.eup %2876  ;;  %s3014_s22 = scalar_lea.vmem %s3782_s24, 4096  ;;  %p3021_p0 = scmp.lt.s32.totalorder %s3782_s24, %s3019_s27 }
 0x2df   : > { %v1349_v26 = vmul.f32 1.442695, %v1318_v32  ;;  %v1378_v42 = vmul.f32 %v2877_v2, %v1362_v0  ;;  %p3015_p11 = scmp.ne.s32.totalorder %s3782_s24, %s3014_s22  ;;  %p3022_p1 = scmp.lt.s32.totalorder %s3020_s0, %s3014_s22 }
 0x2e1   : > { %2884 = vpow2.f32 %v1349_v26  ;;  %v1394_v4 = vadd.f32 %v1378_v42, %v3560_v20  ;;  %p3016_p12 = pnand %p3015_p11, %p3198_p5  ;;  %p3023_p2 = por %p3022_p1, %p3021_p0 }
 0x2e2   : > { %v2879_v6 = vpop.eup %2878 }
 0x2e3   : > { %v1404_v7 = vpack.c.bf16 %v1394_v4, %v1393_v3  ;;  %v1379_v9 = vmul.f32 %v2879_v6, %v1363_v27  ;;  %p3017_p13 = pneg %p3016_p12 }
 0x2e5   : > { %2645 = vmatmul.mubr.bf16.gmra.mxu0 %v1404_v7  ;;  %v1395_v11 = vadd.f32 %v1379_v9, %v3573_v45  ;;  %v2828_v45 = vld [vmem:[%s3838_s10 + $0x8] sm:$0xff]   ;;  %p3024_p3 = pnand %p3023_p2, %p3017_p13 }
 0x2e6   : > { %v2881_v53 = vpop.eup %2880  ;;  %2664 = vmatprep.subr.bf16.mxu0 %v2828_v45 }
 0x2e7   : > { %v1380_v10 = vmul.f32 %v2881_v53, %v1364_v8  ;;  %2665 = vmatpush3.bf16.msra.mxu0 %v2828_v45 }
 0x2e8   : > { %2666 = vmatprep.subr.bf16.mxu0 %v2829_v29 }
 0x2e9   : > { %v1396_v12 = vadd.f32 %v1380_v10, %v1289_v31  ;;  %v2830_v31 = vld [vmem:[%s3840_s12 + $0x70] ss:$8 sps:$4 sm:$0xff]  }
 0x2ea   : > { %v2883_v59 = vpop.eup %2882  ;;  %2692 = vmatpush1.bf16.msra.mxu1 %v2830_v31 }
 0x2eb   : > { %v1405_v15 = vpack.c.bf16 %v1396_v12, %v1395_v11  ;;  %v1381_v18 = vmul.f32 %v2883_v59, %v1365_v13  ;;  %2667 = vmatpush3.bf16.msra.mxu0 %v2829_v29  ;;  %2685 = vmatprep.subr.bf16.mxu1 %v2835_v33 }
 0x2ec   : > { %1899 = vmatprep.subr.bf16.mxu0 %v2832_v30 }
 0x2ed   : > { %2648 = vmatprep.mubr.bf16.mxu0 %v1405_v15  ;;  %v1397_v20 = vadd.f32 %v1381_v18, %v1295_v14 }
 0x2ee   : > { %v2885_v47 = vpop.eup %2884  ;;  %2693 = vmatpush1.bf16.msra.mxu1 %v2833_v34 }
 0x2ef   : > { %v1382_v19 = vmul.f32 %v2885_v47, %v1366_v16  ;;  %2686 = vmatprep.subr.bf16.mxu1 %v2838_v35 }
 0x2f1   : > { %v1398_v21 = vadd.f32 %v1382_v19, %v1299_v55 }
 0x2f2   : > { %2694 = vmatpush1.bf16.msra.mxu1 %v2836_v36 }
 0x2f3   : > { %v1406_v24 = vpack.c.bf16 %v1398_v21, %v1397_v20  ;;  %2687 = vmatprep.subr.bf16.mxu1 %v2841_v37 }
 0x2f5   : > { %2649 = vmatmul.mubr.bf16.gmra.mxu0 %v1406_v24 }
 0x2f6   : > { %2695 = vmatpush1.bf16.msra.mxu1 %v2839_v38 }
 0x2f7   : > { %2688 = vmatprep.subr.bf16.mxu1 %v2844_v39 }
 0x2fa   : > { %2696 = vmatpush1.bf16.msra.mxu1 %v2842_v5 }
 0x385   : > { %v2638_v41 = vpop.f32.mrf.mxu0 }
 0x386   : > { %v1521_v49 = vadd.f32 %v2638_v41, %v3651_v44  ;;  %v2848_v41 = vld [vmem:[%s3840_s12 + $0x10] ss:$8 sps:$4 sm:$0xff]  }
 0x387   : > { %v1512_v43 = vpop.f32.mrf.mxu0 }
 0x388   : > { %v1513_v46 = vadd.f32 %v3651_v44, %v1512_v43  ;;  %v1577_v55 = vmax.f32 %v1521_v49, 0.0  ;;  %v2853_v43 = vld [vmem:[%s3840_s12 + $0x4] ss:$8 sps:$4 sm:$0xff]  }
 0x389   : > { %v2639_v14 = vpop.f32.mrf.mxu0 }
 0x38a   : > { %v1524_v48 = vadd.f32 %v2639_v14, %v3651_v44  ;;  %v1575_v52 = vmax.f32 %v1513_v46, 0.0 }
 0x38b   : > { %v1515_v50 = vpop.f32.mrf.mxu0 }
 0x38c   : > { %v1516_v51 = vadd.f32 %v3651_v44, %v1515_v50  ;;  %v1578_v40 = vmax.f32 %v1524_v48, 0.0  ;;  %v2441_v48 = vld [vmem:[%s3839_s11] ss:$0 sm:$0xff] }
 0x38e   : > { %v1576_v54 = vmax.f32 %v1516_v51, 0.0  ;;  %v1592_v57 = vpack.c.bf16 %v1578_v40, %v1577_v55 }
 0x390   : > { %v1591_v56 = vpack.c.bf16 %v1576_v54, %v1575_v52 }
 0x392   : > { %2668 = vmatprep.mubr.bf16.mxu0 %v1591_v56 }
 0x393   : > { %2669 = vmatmul.mubr.bf16.vlgmr.msra.gmra.mxu0 %v1592_v57 }
 0x394   : > { %1900 = vmatpush1.bf16.msra.mxu0 %v2830_v31 }
 0x395   : > { %v2642_v58 = vpop.f32.mrf.mxu0  ;;  %1901 = vmatprep.subr.bf16.mxu0 %v2835_v33 }
 0x396   : > { %v1537_v0 = vadd.f32 %v2642_v58, %v3651_v44 }
 0x397   : > { %v1528_v60 = vpop.f32.mrf.mxu0 }
 0x398   : > { %1902 = vmatpush1.bf16.msra.mxu0 %v2833_v34  ;;  %v1529_v62 = vadd.f32 %v3651_v44, %v1528_v60  ;;  %v1581_v3 = vmax.f32 %v1537_v0, 0.0 }
 0x399   : > { %v2643_v61 = vpop.f32.mrf.mxu0  ;;  %1903 = vmatprep.subr.bf16.mxu0 %v2838_v35 }
 0x39a   : > { %v1540_v63 = vadd.f32 %v2643_v61, %v3651_v44  ;;  %v1579_v26 = vmax.f32 %v1529_v62, 0.0 }
 0x39b   : > { %v1531_v32 = vpop.f32.mrf.mxu0 }
 0x39c   : > { %v1532_v1 = vadd.f32 %v3651_v44, %v1531_v32  ;;  %1904 = vmatpush1.bf16.msra.mxu0 %v2836_v36  ;;  %v1582_v2 = vmax.f32 %v1540_v63, 0.0 }
 0x39d   : > { %1905 = vmatprep.subr.bf16.mxu0 %v2841_v37 }
 0x39e   : > { %v1580_v42 = vmax.f32 %v1532_v1, 0.0  ;;  %v1594_v6 = vpack.c.bf16 %v1582_v2, %v1581_v3 }
 0x3a0   : > { %v1593_v4 = vpack.c.bf16 %v1580_v42, %v1579_v26  ;;  %1906 = vmatpush1.bf16.msra.mxu0 %v2839_v38  ;;  %v2847_v38 = vld [vmem:[%s3840_s12 + $0x24] ss:$8 sps:$4 sm:$0xff]  }
 0x3a1   : > { %1907 = vmatprep.subr.bf16.mxu0 %v2844_v39  ;;  %v2845_v39 = vld [vmem:[%s3840_s12 + $0x20] ss:$8 sps:$4 sm:$0xff]   ;;  %2689 = vmatprep.subr.bf16.mxu1 %v2847_v38 }
 0x3a2   : > { %2672 = vmatprep.mubr.bf16.mxu0 %v1593_v4  ;;  %2697 = vmatpush1.bf16.msra.mxu1 %v2845_v39 }
 0x3a3   : > { %2673 = vmatmul.mubr.bf16.gmra.mxu0 %v1594_v6 }
 0x3a4   : > { %1908 = vmatpush1.bf16.msra.mxu0 %v2842_v5  ;;  %v2850_v5 = vld [vmem:[%s3840_s12 + $0x14] ss:$8 sps:$4 sm:$0xff]  }
 0x3a5   : > { %v2646_v27 = vpop.f32.mrf.mxu0  ;;  %1909 = vmatprep.subr.bf16.mxu0 %v2847_v38  ;;  %2690 = vmatprep.subr.bf16.mxu1 %v2850_v5 }
 0x3a6   : > { %v1553_v10 = vadd.f32 %v2646_v27, %v3651_v44  ;;  %2698 = vmatpush1.bf16.msra.mxu1 %v2848_v41 }
 0x3a7   : > { %v1544_v7 = vpop.f32.mrf.mxu0  ;;  %2691 = vmatprep.subr.bf16.mxu1 %v2853_v43 }
 0x3a8   : > { %v1545_v9 = vadd.f32 %v3651_v44, %v1544_v7  ;;  %v1585_v16 = vmax.f32 %v1553_v10, 0.0  ;;  %1910 = vmatpush1.bf16.msra.mxu0 %v2845_v39 }
 0x3a9   : > { %v2647_v8 = vpop.f32.mrf.mxu0  ;;  %1911 = vmatprep.subr.bf16.mxu0 %v2850_v5 }
 0x3aa   : > { %v1556_v53 = vadd.f32 %v2647_v8, %v3651_v44  ;;  %v1583_v13 = vmax.f32 %v1545_v9, 0.0 }
 0x3ab   : > { %v1547_v11 = vpop.f32.mrf.mxu0 }
 0x3ac   : > { %v1548_v12 = vadd.f32 %v3651_v44, %v1547_v11  ;;  %v1586_v59 = vmax.f32 %v1556_v53, 0.0  ;;  %1912 = vmatpush1.bf16.msra.mxu0 %v2848_v41  ;;  %v1807_v41 = vld [vmem:[%s3841_s13] sm:$0x3] }
 0x3ad   : > { %1913 = vmatprep.subr.bf16.mxu0 %v2853_v43  ;;  %v3702_v43 = vrot.slane %v1807_v41, %v1102_v23 }
 0x3ae   : > { %v1584_v15 = vmax.f32 %v1548_v12, 0.0  ;;  %v1596_v47 = vpack.c.bf16 %v1586_v59, %v1585_v16 }
 0x3b0   : > { %v1595_v18 = vpack.c.bf16 %v1584_v15, %v1583_v13 }
 0x3b2   : > { %2676 = vmatprep.mubr.bf16.mxu0 %v1595_v18 }
 0x3b3   : > { %2677 = vmatmul.mubr.bf16.gmra.mxu0 %v1596_v47 }
 0x3b5   : > { %v2650_v19 = vpop.f32.mrf.mxu0 }
 0x3b6   : > { %v1569_v45 = vadd.f32 %v2650_v19, %v3651_v44 }
 0x3b7   : > { %v1560_v20 = vpop.f32.mrf.mxu0 }
 0x3b8   : > { %v1561_v24 = vadd.f32 %v3651_v44, %v1560_v20  ;;  %v1589_v35 = vmax.f32 %v1569_v45, 0.0 }
 0x3b9   : > { %v2651_v21 = vpop.f32.mrf.mxu0 }
 0x3ba   : > { %v1572_v28 = vadd.f32 %v2651_v21, %v3651_v44  ;;  %v1587_v33 = vmax.f32 %v1561_v24, 0.0 }
 0x3bb   : > { %v1563_v29 = vpop.f32.mrf.mxu0 }
 0x3bc   : > { %v1564_v30 = vadd.f32 %v3651_v44, %v1563_v29  ;;  %v1590_v31 = vmax.f32 %v1572_v28, 0.0  ;;  %v2851_v44 = vld [vmem:[%s3840_s12] ss:$8 sps:$4 sm:$0xff]  }
 0x3bd   : > { %1914 = vmatpush1.bf16.msra.mxu0 %v2851_v44  ;;  %2699 = vmatpush1.bf16.msra.mxu1 %v2851_v44  ;;  %v3706_v44 = vrot.slane %v1807_v41, %v1106_v25 }
 0x3be   : > { %v1588_v34 = vmax.f32 %v1564_v30, 0.0  ;;  %v1598_v37 = vpack.c.bf16 %v1590_v31, %v1589_v35 }
 0x3c0   : > { %v1597_v36 = vpack.c.bf16 %v1588_v34, %v1587_v33 }
 0x3c2   : > { %2680 = vmatprep.mubr.bf16.mxu0 %v1597_v36 }
 0x3c3   : > { %2681 = vmatmul.mubr.bf16.gmra.mxu0 %v1598_v37 }
 0x3c4   : > { %1931 = vmatprep.mubr.bf16.mxu0 %v3076_v17 }
 0x453   : > { %v2670_v14 = vpop.f32.mrf.mxu0 }
 0x454   : > { %v1713_v57 = vadd.f32 %v2670_v14, %v2441_v48 }
 0x455   : > { %v1704_v46 = vpop.f32.mrf.mxu0 }
 0x456   : > { %v1705_v50 = vadd.f32 %v2441_v48, %v1704_v46  ;;  %v1769_v61 = vmax.f32 %v1713_v57, 0.0 }
 0x457   : > { %v2671_v49 = vpop.f32.mrf.mxu0 }
 0x458   : > { %v1767_v52 = vmax.f32 %v1705_v50, 0.0  ;;  %v1716_v55 = vadd.f32 %v2671_v49, %v2441_v48 }
 0x459   : > { %v1707_v51 = vpop.f32.mrf.mxu0 }
 0x45a   : > { %v1708_v40 = vadd.f32 %v2441_v48, %v1707_v51  ;;  %v1770_v58 = vmax.f32 %v1716_v55, 0.0 }
 0x45c   : > { %v1768_v54 = vmax.f32 %v1708_v40, 0.0  ;;  %v1784_v63 = vpack.c.bf16 %v1770_v58, %v1769_v61 }
 0x45e   : > { %v1783_v56 = vpack.c.bf16 %v1768_v54, %v1767_v52 }
 0x460   : > { %1932 = vmatmul.mubr.bf16.vlgmr.msra.gmra.mxu0 %v1783_v56 }
 0x461   : > { %1941 = vmatprep.mubr.bf16.mxu0 %v3076_v17 }
 0x463   : > { %v2674_v60 = vpop.f32.mrf.mxu0 }
 0x464   : > { %v1729_v6 = vadd.f32 %v2674_v60, %v2441_v48 }
 0x465   : > { %v1720_v62 = vpop.f32.mrf.mxu0 }
 0x466   : > { %v1721_v32 = vadd.f32 %v2441_v48, %v1720_v62  ;;  %v1773_v8 = vmax.f32 %v1729_v6, 0.0 }
 0x467   : > { %v2675_v0 = vpop.f32.mrf.mxu0 }
 0x468   : > { %1942 = vmatmul.mubr.bf16.gmra.mxu0 %v1784_v63  ;;  %v1771_v26 = vmax.f32 %v1721_v32, 0.0  ;;  %v1732_v3 = vadd.f32 %v2675_v0, %v2441_v48 }
 0x469   : > { %v1723_v1 = vpop.f32.mrf.mxu0 }
 0x46a   : > { %v1724_v2 = vadd.f32 %v2441_v48, %v1723_v1  ;;  %v1774_v27 = vmax.f32 %v1732_v3, 0.0 }
 0x46c   : > { %v1772_v42 = vmax.f32 %v1724_v2, 0.0  ;;  %v1786_v53 = vpack.c.bf16 %v1774_v27, %v1773_v8 }
 0x46e   : > { %v1785_v4 = vpack.c.bf16 %v1772_v42, %v1771_v26 }
 0x470   : > { %1952 = vmatmul.mubr.bf16.vlgmr.msra.gmra.mxu1 %v1785_v4 }
 0x471   : > { %1961 = vmatprep.mubr.bf16.mxu1 %v3076_v17 }
 0x473   : > { %v2678_v7 = vpop.f32.mrf.mxu0 }
 0x474   : > { %v1745_v47 = vadd.f32 %v2678_v7, %v2441_v48 }
 0x475   : > { %v1736_v9 = vpop.f32.mrf.mxu0 }
 0x476   : > { %v1737_v11 = vadd.f32 %v2441_v48, %v1736_v9  ;;  %v1777_v21 = vmax.f32 %v1745_v47, 0.0 }
 0x477   : > { %v2679_v10 = vpop.f32.mrf.mxu0 }
 0x478   : > { %1962 = vmatmul.mubr.bf16.gmra.mxu1 %v1786_v53  ;;  %v1775_v13 = vmax.f32 %v1737_v11, 0.0  ;;  %v1748_v16 = vadd.f32 %v2679_v10, %v2441_v48 }
 0x479   : > { %v1739_v12 = vpop.f32.mrf.mxu0  ;;  %1971 = vmatprep.mubr.bf16.mxu1 %v3076_v17 }
 0x47a   : > { %v1740_v59 = vadd.f32 %v2441_v48, %v1739_v12  ;;  %v1778_v19 = vmax.f32 %v1748_v16, 0.0 }
 0x47c   : > { %v1776_v15 = vmax.f32 %v1740_v59, 0.0  ;;  %v1788_v28 = vpack.c.bf16 %v1778_v19, %v1777_v21 }
 0x47e   : > { %v1787_v18 = vpack.c.bf16 %v1776_v15, %v1775_v13 }
 0x480   : > { %1972 = vmatmul.mubr.bf16.gmra.mxu1 %v1787_v18 }
 0x481   : > { %1981 = vmatprep.mubr.bf16.mxu1 %v3076_v17 }
 0x483   : > { %v2682_v20 = vpop.f32.mrf.mxu0 }
 0x484   : > { %v1761_v37 = vadd.f32 %v2682_v20, %v2441_v48 }
 0x485   : > { %v1752_v24 = vpop.f32.mrf.mxu0 }
 0x486   : > { %v1753_v29 = vadd.f32 %v2441_v48, %v1752_v24  ;;  %v1781_v39 = vmax.f32 %v1761_v37, 0.0 }
 0x487   : > { %v2683_v45 = vpop.f32.mrf.mxu0 }
 0x488   : > { %1982 = vmatmul.mubr.bf16.gmra.mxu1 %v1788_v28  ;;  %v1779_v33 = vmax.f32 %v1753_v29, 0.0  ;;  %v1764_v35 = vadd.f32 %v2683_v45, %v2441_v48 }
 0x489   : > { %v1755_v30 = vpop.f32.mrf.mxu0  ;;  %1991 = vmatprep.mubr.bf16.mxu1 %v3076_v17 }
 0x48a   : > { %v1756_v31 = vadd.f32 %v2441_v48, %v1755_v30  ;;  %v1782_v38 = vmax.f32 %v1764_v35, 0.0 }
 0x48c   : > { %v1780_v34 = vmax.f32 %v1756_v31, 0.0  ;;  %v1790_v5 = vpack.c.bf16 %v1782_v38, %v1781_v39 }
 0x48e   : > { %v1789_v36 = vpack.c.bf16 %v1780_v34, %v1779_v33 }
 0x490   : > { %1992 = vmatmul.mubr.bf16.gmra.mxu1 %v1789_v36 }
 0x491   : > { %2001 = vmatprep.mubr.bf16.mxu1 %v3076_v17 }
 0x498   : > { %2002 = vmatmul.mubr.bf16.gmra.mxu1 %v1790_v5 }
 0x520   : > { %v1933_v14 = vpop.f32.mrf.mxu0 }
 0x521   : > { %v1934_v46 = vadd.f32 %v1933_v14, %v3702_v43 }
 0x522   : > { %v1935_v17 = vpop.f32.mrf.mxu0 }
 0x523   : > { %v2012_v48 = vsub.f32 0.0, %v1934_v46  ;;  %v1936_v49 = vadd.f32 %v1935_v17, %v3706_v44 }
 0x524   : > { %v1937_v50 = vpop.f32.mrf.mxu0 }
 0x525   : > { %v2044_v51 = vmul.f32 1.442695, %v2012_v48  ;;  %v2013_v40 = vsub.f32 0.0, %v1936_v49  ;;  %v1938_v52 = vadd.f32 %v1937_v50, %v3702_v43 }
 0x526   : > { %v1939_v54 = vpop.f32.mrf.mxu0 }
 0x527   : > { %2886 = vpow2.f32 %v2044_v51  ;;  %v2046_v23 = vmul.f32 1.442695, %v2013_v40  ;;  %v2014_v55 = vsub.f32 0.0, %v1938_v52  ;;  %v1940_v22 = vadd.f32 %v1939_v54, %v3706_v44 }
 0x528   : > { %v1943_v25 = vpop.f32.mrf.mxu0 }
 0x529   : > { %2888 = vpow2.f32 %v2046_v23  ;;  %v2048_v56 = vmul.f32 1.442695, %v2014_v55  ;;  %v2015_v57 = vsub.f32 0.0, %v1940_v22  ;;  %v1944_v58 = vadd.f32 %v1943_v25, %v3702_v43 }
 0x52a   : > { %v1945_v60 = vpop.f32.mrf.mxu0 }
 0x52b   : > { %2890 = vpow2.f32 %v2048_v56  ;;  %v2050_v61 = vmul.f32 1.442695, %v2015_v57  ;;  %v2016_v62 = vsub.f32 0.0, %v1944_v58  ;;  %v1946_v63 = vadd.f32 %v1945_v60, %v3706_v44 }
 0x52c   : > { %v1947_v0 = vpop.f32.mrf.mxu0 }
 0x52d   : > { %2892 = vpow2.f32 %v2050_v61  ;;  %v2052_v32 = vmul.f32 1.442695, %v2016_v62  ;;  %v2017_v1 = vsub.f32 0.0, %v1946_v63  ;;  %v1948_v2 = vadd.f32 %v1947_v0, %v3702_v43 }
 0x52e   : > { %v1949_v26 = vpop.f32.mrf.mxu0 }
 0x52f   : > { %2894 = vpow2.f32 %v2052_v32  ;;  %v2054_v42 = vmul.f32 1.442695, %v2017_v1  ;;  %v2018_v3 = vsub.f32 0.0, %v1948_v2  ;;  %v1950_v4 = vadd.f32 %v1949_v26, %v3706_v44 }
 0x530   : > { %v1953_v6 = vpop.f32.mrf.mxu1 }
 0x531   : > { %2896 = vpow2.f32 %v2054_v42  ;;  %v2056_v27 = vmul.f32 1.442695, %v2018_v3  ;;  %v2019_v7 = vsub.f32 0.0, %v1950_v4  ;;  %v1954_v8 = vadd.f32 %v1953_v6, %v3702_v43 }
 0x532   : > { %v1955_v9 = vpop.f32.mrf.mxu1 }
 0x533   : > { %2898 = vpow2.f32 %v2056_v27  ;;  %v2058_v53 = vmul.f32 1.442695, %v2019_v7  ;;  %v2020_v10 = vsub.f32 0.0, %v1954_v8  ;;  %v1956_v11 = vadd.f32 %v1955_v9, %v3706_v44 }
 0x534   : > { %v2887_v12 = vpop.eup %2886  ;;  %v1957_v59 = vpop.f32.mrf.mxu1 }
 0x535   : > { %v2108_v13 = vadd.f32 1.0, %v2887_v12  ;;  %2900 = vpow2.f32 %v2058_v53  ;;  %v2060_v15 = vmul.f32 1.442695, %v2020_v10  ;;  %v2021_v16 = vsub.f32 0.0, %v1956_v11 }
 0x536   : > { %v2889_v18 = vpop.eup %2888  ;;  %v1958_v47 = vadd.f32 %v1957_v59, %v3702_v43  ;;  %v1959_v19 = vpop.f32.mrf.mxu1 }
 0x537   : > { %2902 = vrcp.f32 %v2108_v13  ;;  %v2109_v20 = vadd.f32 1.0, %v2889_v18  ;;  %v2062_v21 = vmul.f32 1.442695, %v2021_v16  ;;  %v1960_v24 = vadd.f32 %v1959_v19, %v3706_v44 }
 0x538   : > { %v2891_v28 = vpop.eup %2890  ;;  %2904 = vpow2.f32 %v2060_v15  ;;  %v2022_v45 = vsub.f32 0.0, %v1958_v47  ;;  %v1963_v29 = vpop.f32.mrf.mxu1 }
 0x539   : > { %2906 = vrcp.f32 %v2109_v20  ;;  %v2110_v30 = vadd.f32 1.0, %v2891_v28  ;;  %v2023_v31 = vsub.f32 0.0, %v1960_v24  ;;  %v1964_v33 = vadd.f32 %v1963_v29, %v3702_v43 }
 0x53a   : > { %v2893_v34 = vpop.eup %2892  ;;  %2908 = vpow2.f32 %v2062_v21  ;;  %v2064_v35 = vmul.f32 1.442695, %v2022_v45  ;;  %v1965_v36 = vpop.f32.mrf.mxu1 }
 0x53b   : > { %2910 = vrcp.f32 %v2110_v30  ;;  %v2111_v37 = vadd.f32 1.0, %v2893_v34  ;;  %v2066_v38 = vmul.f32 1.442695, %v2023_v31  ;;  %v2024_v39 = vsub.f32 0.0, %v1964_v33 }
 0x53c   : > { %v2895_v5 = vpop.eup %2894  ;;  %2912 = vpow2.f32 %v2064_v35  ;;  %v1966_v41 = vadd.f32 %v1965_v36, %v3706_v44  ;;  %v1967_v14 = vpop.f32.mrf.mxu1 }
 0x53d   : > { %2914 = vrcp.f32 %v2111_v37  ;;  %v2112_v46 = vadd.f32 1.0, %v2895_v5  ;;  %v2068_v17 = vmul.f32 1.442695, %v2024_v39  ;;  %v1968_v48 = vadd.f32 %v1967_v14, %v3702_v43 }
 0x53e   : > { %v2897_v49 = vpop.eup %2896  ;;  %2916 = vpow2.f32 %v2066_v38  ;;  %v2025_v50 = vsub.f32 0.0, %v1966_v41  ;;  %v1969_v51 = vpop.f32.mrf.mxu1 }
 0x53f   : > { %2918 = vrcp.f32 %v2112_v46  ;;  %v2113_v40 = vadd.f32 1.0, %v2897_v49  ;;  %v2026_v52 = vsub.f32 0.0, %v1968_v48  ;;  %v1970_v54 = vadd.f32 %v1969_v51, %v3706_v44 }
 0x540   : > { %v2899_v23 = vpop.eup %2898  ;;  %2920 = vpow2.f32 %v2068_v17  ;;  %v2070_v55 = vmul.f32 1.442695, %v2025_v50  ;;  %v1973_v22 = vpop.f32.mrf.mxu1 }
 0x541   : > { %2922 = vrcp.f32 %v2113_v40  ;;  %v2114_v25 = vadd.f32 1.0, %v2899_v23  ;;  %v2072_v56 = vmul.f32 1.442695, %v2026_v52  ;;  %v2027_v57 = vsub.f32 0.0, %v1970_v54 }
 0x542   : > { %v2901_v58 = vpop.eup %2900  ;;  %2924 = vpow2.f32 %v2070_v55  ;;  %v1974_v60 = vadd.f32 %v1973_v22, %v3702_v43  ;;  %v1975_v61 = vpop.f32.mrf.mxu1 }
 0x543   : > { %2926 = vrcp.f32 %v2114_v25  ;;  %v2115_v62 = vadd.f32 1.0, %v2901_v58  ;;  %v2074_v63 = vmul.f32 1.442695, %v2027_v57  ;;  %v1976_v0 = vadd.f32 %v1975_v61, %v3706_v44 }
 0x544   : > { %v2903_v32 = vpop.eup %2902  ;;  %2928 = vpow2.f32 %v2072_v56  ;;  %v2028_v1 = vsub.f32 0.0, %v1974_v60  ;;  %v1977_v2 = vpop.f32.mrf.mxu1 }
 0x545   : > { %v2905_v26 = vpop.eup %2904  ;;  %2172 = vst [vmem:[%s3729_s20] sm:$0xff] %v2903_v32  ;;  %2930 = vrcp.f32 %v2115_v62  ;;  %v2029_v42 = vsub.f32 0.0, %v1976_v0  ;;  %v1978_v3 = vadd.f32 %v1977_v2, %v3702_v43 }
 0x546   : > { %v2907_v4 = vpop.eup %2906  ;;  %v2116_v6 = vadd.f32 1.0, %v2905_v26  ;;  %2932 = vpow2.f32 %v2074_v63  ;;  %v2076_v27 = vmul.f32 1.442695, %v2028_v1  ;;  %v1979_v7 = vpop.f32.mrf.mxu1 }
 0x547   : > { %v2909_v8 = vpop.eup %2908  ;;  %2173 = vst [vmem:[%s3729_s20 + $0x8] sm:$0xff] %v2907_v4  ;;  %v2078_v9 = vmul.f32 1.442695, %v2029_v42  ;;  %v2030_v53 = vsub.f32 0.0, %v1978_v3  ;;  %v1980_v10 = vadd.f32 %v1979_v7, %v3706_v44 }
 0x548   : > { %v2911_v11 = vpop.eup %2910  ;;  %2934 = vrcp.f32 %v2116_v6  ;;  %v2117_v12 = vadd.f32 1.0, %v2909_v8  ;;  %v1983_v59 = vpop.f32.mrf.mxu1 }
 0x549   : > { %v2913_v13 = vpop.eup %2912  ;;  %2174 = vst [vmem:[%s3729_s20 + $0x10] sm:$0xff] %v2911_v11  ;;  %2936 = vpow2.f32 %v2076_v27  ;;  %v2080_v15 = vmul.f32 1.442695, %v2030_v53  ;;  %v2031_v16 = vsub.f32 0.0, %v1980_v10  ;;  %v1984_v18 = vadd.f32 %v1983_v59, %v3702_v43 }
 0x54a   : > { %v2915_v47 = vpop.eup %2914  ;;  %2938 = vrcp.f32 %v2117_v12  ;;  %v2118_v19 = vadd.f32 1.0, %v2913_v13  ;;  %v1985_v20 = vpop.f32.mrf.mxu1 }
 0x54b   : > { %v2917_v21 = vpop.eup %2916  ;;  %2175 = vst [vmem:[%s3729_s20 + $0x18] sm:$0xff] %v2915_v47  ;;  %2940 = vpow2.f32 %v2078_v9  ;;  %v2082_v24 = vmul.f32 1.442695, %v2031_v16  ;;  %v2032_v28 = vsub.f32 0.0, %v1984_v18  ;;  %v1986_v45 = vadd.f32 %v1985_v20, %v3706_v44 }
 0x54c   : > { %v2919_v29 = vpop.eup %2918  ;;  %2942 = vrcp.f32 %v2118_v19  ;;  %v2119_v30 = vadd.f32 1.0, %v2917_v21  ;;  %v1987_v31 = vpop.f32.mrf.mxu1 }
 0x54d   : > { %v2921_v33 = vpop.eup %2920  ;;  %2176 = vst [vmem:[%s3729_s20 + $0x20] sm:$0xff] %v2919_v29  ;;  %2944 = vpow2.f32 %v2080_v15  ;;  %v2084_v34 = vmul.f32 1.442695, %v2032_v28  ;;  %v2033_v35 = vsub.f32 0.0, %v1986_v45  ;;  %v1988_v36 = vadd.f32 %v1987_v31, %v3702_v43 }
 0x54e   : > { %v2923_v37 = vpop.eup %2922  ;;  %2946 = vrcp.f32 %v2119_v30  ;;  %v2120_v38 = vadd.f32 1.0, %v2921_v33  ;;  %v1989_v39 = vpop.f32.mrf.mxu1 }
 0x54f   : > { %v2925_v5 = vpop.eup %2924  ;;  %2177 = vst [vmem:[%s3729_s20 + $0x28] sm:$0xff] %v2923_v37  ;;  %2948 = vpow2.f32 %v2082_v24  ;;  %v2086_v41 = vmul.f32 1.442695, %v2033_v35  ;;  %v2034_v14 = vsub.f32 0.0, %v1988_v36  ;;  %v1990_v46 = vadd.f32 %v1989_v39, %v3706_v44 }
 0x550   : > { %v2927_v17 = vpop.eup %2926  ;;  %2950 = vrcp.f32 %v2120_v38  ;;  %v2121_v48 = vadd.f32 1.0, %v2925_v5  ;;  %v1993_v49 = vpop.f32.mrf.mxu1 }
 0x551   : > { %v2929_v50 = vpop.eup %2928  ;;  %2178 = vst [vmem:[%s3729_s20 + $0x30] sm:$0xff] %v2927_v17  ;;  %2952 = vpow2.f32 %v2084_v34  ;;  %v2088_v51 = vmul.f32 1.442695, %v2034_v14  ;;  %v2035_v40 = vsub.f32 0.0, %v1990_v46  ;;  %v1994_v52 = vadd.f32 %v1993_v49, %v3702_v43 }
 0x552   : > { %v2931_v54 = vpop.eup %2930  ;;  %2954 = vrcp.f32 %v2121_v48  ;;  %v2122_v23 = vadd.f32 1.0, %v2929_v50  ;;  %v1995_v55 = vpop.f32.mrf.mxu1 }
 0x553   : > { %v2933_v22 = vpop.eup %2932  ;;  %2179 = vst [vmem:[%s3729_s20 + $0x38] sm:$0xff] %v2931_v54  ;;  %2956 = vpow2.f32 %v2086_v41  ;;  %v2090_v25 = vmul.f32 1.442695, %v2035_v40  ;;  %v2036_v56 = vsub.f32 0.0, %v1994_v52  ;;  %v1996_v57 = vadd.f32 %v1995_v55, %v3706_v44 }
 0x554   : > { %2958 = vrcp.f32 %v2122_v23  ;;  %v2123_v58 = vadd.f32 1.0, %v2933_v22  ;;  %v1997_v60 = vpop.f32.mrf.mxu1 }
 0x555   : > { %v2935_v61 = vpop.eup %2934  ;;  %2960 = vpow2.f32 %v2088_v51  ;;  %v2092_v62 = vmul.f32 1.442695, %v2036_v56  ;;  %v2037_v63 = vsub.f32 0.0, %v1996_v57  ;;  %v1998_v0 = vadd.f32 %v1997_v60, %v3702_v43 }
 0x556   : > { %v2937_v32 = vpop.eup %2936  ;;  %2180 = vst [vmem:[%s3729_s20 + $0x40] sm:$0xff] %v2935_v61  ;;  %2962 = vrcp.f32 %v2123_v58  ;;  %v1999_v1 = vpop.f32.mrf.mxu1 }
 0x557   : > { %v2939_v2 = vpop.eup %2938  ;;  %v2124_v26 = vadd.f32 1.0, %v2937_v32  ;;  %2964 = vpow2.f32 %v2090_v25  ;;  %v2094_v42 = vmul.f32 1.442695, %v2037_v63  ;;  %v2038_v3 = vsub.f32 0.0, %v1998_v0 }
 0x558   : > { %v2941_v4 = vpop.eup %2940  ;;  %2181 = vst [vmem:[%s3729_s20 + $0x48] sm:$0xff] %v2939_v2  ;;  %2966 = vpow2.f32 %v2092_v62  ;;  %v2000_v6 = vadd.f32 %v1999_v1, %v3706_v44  ;;  %v2003_v27 = vpop.f32.mrf.mxu1 }
 0x559   : > { %v2943_v7 = vpop.eup %2942  ;;  %2968 = vrcp.f32 %v2124_v26  ;;  %v2125_v8 = vadd.f32 1.0, %v2941_v4  ;;  %v2096_v9 = vmul.f32 1.442695, %v2038_v3  ;;  %v2004_v53 = vadd.f32 %v2003_v27, %v3702_v43 }
 0x55a   : > { %v2945_v10 = vpop.eup %2944  ;;  %2182 = vst [vmem:[%s3729_s20 + $0x50] sm:$0xff] %v2943_v7  ;;  %2970 = vpow2.f32 %v2094_v42  ;;  %v2039_v11 = vsub.f32 0.0, %v2000_v6  ;;  %v2005_v12 = vpop.f32.mrf.mxu1 }
 0x55b   : > { %v2947_v59 = vpop.eup %2946  ;;  %2972 = vrcp.f32 %v2125_v8  ;;  %v2126_v13 = vadd.f32 1.0, %v2945_v10  ;;  %v2040_v15 = vsub.f32 0.0, %v2004_v53  ;;  %v2006_v16 = vadd.f32 %v2005_v12, %v3706_v44 }
 0x55c   : > { %v2949_v18 = vpop.eup %2948  ;;  %2183 = vst [vmem:[%s3729_s20 + $0x58] sm:$0xff] %v2947_v59  ;;  %2974 = vpow2.f32 %v2096_v9  ;;  %v2098_v47 = vmul.f32 1.442695, %v2039_v11  ;;  %v2007_v19 = vpop.f32.mrf.mxu1 }
 0x55d   : > { %v2951_v20 = vpop.eup %2950  ;;  %2976 = vrcp.f32 %v2126_v13  ;;  %v2127_v21 = vadd.f32 1.0, %v2949_v18  ;;  %v2100_v24 = vmul.f32 1.442695, %v2040_v15  ;;  %v2041_v28 = vsub.f32 0.0, %v2006_v16 }
 0x55e   : > { %v2953_v45 = vpop.eup %2952  ;;  %2184 = vst [vmem:[%s3729_s20 + $0x60] sm:$0xff] %v2951_v20  ;;  %2978 = vpow2.f32 %v2098_v47  ;;  %v2008_v29 = vadd.f32 %v2007_v19, %v3702_v43  ;;  %v2009_v30 = vpop.f32.mrf.mxu1 }
 0x55f   : > { %v2955_v31 = vpop.eup %2954  ;;  %2980 = vrcp.f32 %v2127_v21  ;;  %v2128_v33 = vadd.f32 1.0, %v2953_v45  ;;  %v2102_v34 = vmul.f32 1.442695, %v2041_v28  ;;  %v2010_v35 = vadd.f32 %v2009_v30, %v3706_v44 }
 0x560   : > { %v2957_v36 = vpop.eup %2956  ;;  %2185 = vst [vmem:[%s3729_s20 + $0x68] sm:$0xff] %v2955_v31  ;;  %2982 = vpow2.f32 %v2100_v24  ;;  %v2042_v37 = vsub.f32 0.0, %v2008_v29 }
 0x561   : > { %v2959_v38 = vpop.eup %2958  ;;  %2984 = vrcp.f32 %v2128_v33  ;;  %v2129_v39 = vadd.f32 1.0, %v2957_v36  ;;  %v2043_v5 = vsub.f32 0.0, %v2010_v35 }
 0x562   : > { %v2961_v41 = vpop.eup %2960  ;;  %2186 = vst [vmem:[%s3729_s20 + $0x70] sm:$0xff] %v2959_v38  ;;  %2986 = vpow2.f32 %v2102_v34  ;;  %v2104_v43 = vmul.f32 1.442695, %v2042_v37 }
 0x563   : > { %v2963_v14 = vpop.eup %2962  ;;  %2988 = vrcp.f32 %v2129_v39  ;;  %v2130_v46 = vadd.f32 1.0, %v2961_v41  ;;  %v2106_v17 = vmul.f32 1.442695, %v2043_v5 }
 0x564   : > { %v2965_v48 = vpop.eup %2964  ;;  %2187 = vst [vmem:[%s3729_s20 + $0x78] sm:$0xff] %v2963_v14  ;;  %2990 = vpow2.f32 %v2104_v43 }
 0x565   : > { %v2967_v44 = vpop.eup %2966  ;;  %2992 = vrcp.f32 %v2130_v46  ;;  %v2131_v49 = vadd.f32 1.0, %v2965_v48 }
 0x566   : > { %v2969_v50 = vpop.eup %2968  ;;  %v2132_v51 = vadd.f32 1.0, %v2967_v44  ;;  %2994 = vpow2.f32 %v2106_v17 }
 0x567   : > { %v2971_v40 = vpop.eup %2970  ;;  %2188 = vst [vmem:[%s3729_s20 + $0x80] sm:$0xff] %v2969_v50  ;;  %2996 = vrcp.f32 %v2131_v49 }
 0x568   : > { %v2973_v52 = vpop.eup %2972  ;;  %2998 = vrcp.f32 %v2132_v51  ;;  %v2133_v54 = vadd.f32 1.0, %v2971_v40 }
 0x569   : > { %v2975_v23 = vpop.eup %2974  ;;  %2189 = vst [vmem:[%s3729_s20 + $0x88] sm:$0xff] %v2973_v52 }
 0x56a   : > { %v2977_v55 = vpop.eup %2976  ;;  %3000 = vrcp.f32 %v2133_v54  ;;  %v2134_v22 = vadd.f32 1.0, %v2975_v23 }
 0x56b   : > { %v2979_v25 = vpop.eup %2978  ;;  %2190 = vst [vmem:[%s3729_s20 + $0x90] sm:$0xff] %v2977_v55 }
 0x56c   : > { %v2981_v56 = vpop.eup %2980  ;;  %3002 = vrcp.f32 %v2134_v22  ;;  %v2135_v57 = vadd.f32 1.0, %v2979_v25 }
 0x56d   : > { %v2983_v58 = vpop.eup %2982  ;;  %2191 = vst [vmem:[%s3729_s20 + $0x98] sm:$0xff] %v2981_v56 }
 0x56e   : > { %v2985_v60 = vpop.eup %2984  ;;  %3004 = vrcp.f32 %v2135_v57  ;;  %v2136_v61 = vadd.f32 1.0, %v2983_v58 }
 0x56f   : > { %v2987_v62 = vpop.eup %2986  ;;  %2192 = vst [vmem:[%s3729_s20 + $0xa0] sm:$0xff] %v2985_v60 }
 0x570   : > { %v2989_v63 = vpop.eup %2988  ;;  %3006 = vrcp.f32 %v2136_v61  ;;  %v2137_v0 = vadd.f32 1.0, %v2987_v62 }
 0x571   : > { %v2991_v32 = vpop.eup %2990  ;;  %2193 = vst [vmem:[%s3729_s20 + $0xa8] sm:$0xff] %v2989_v63 }
 0x572   : > { %v2993_v1 = vpop.eup %2992  ;;  %3008 = vrcp.f32 %v2137_v0  ;;  %v2138_v2 = vadd.f32 1.0, %v2991_v32 }
 0x573   : > { %v2995_v26 = vpop.eup %2994  ;;  %2194 = vst [vmem:[%s3729_s20 + $0xb0] sm:$0xff] %v2993_v1 }
 0x574   : > { %v2997_v42 = vpop.eup %2996  ;;  %3010 = vrcp.f32 %v2138_v2  ;;  %v2139_v3 = vadd.f32 1.0, %v2995_v26 }
 0x575   : > { %v2999_v4 = vpop.eup %2998  ;;  %2195 = vst [vmem:[%s3729_s20 + $0xb8] sm:$0xff] %v2997_v42 }
 0x576   : > { %2196 = vst [vmem:[%s3729_s20 + $0xc0] sm:$0xff] %v2999_v4  ;;  %3012 = vrcp.f32 %v2139_v3 }
 0x577   : > { %v3001_v6 = vpop.eup %3000 }
 0x578   : > { %2197 = vst [vmem:[%s3729_s20 + $0xc8] sm:$0xff] %v3001_v6 }
 0x579   : > { %v3003_v27 = vpop.eup %3002 }
 0x57a   : > { %2198 = vst [vmem:[%s3729_s20 + $0xd0] sm:$0xff] %v3003_v27 }
 0x57b   : > { %v3005_v7 = vpop.eup %3004 }
 0x57c   : > { %2199 = vst [vmem:[%s3729_s20 + $0xd8] sm:$0xff] %v3005_v7 }
 0x57d   : > { %v3007_v8 = vpop.eup %3006 }
 0x57e   : > { %2200 = vst [vmem:[%s3729_s20 + $0xe0] sm:$0xff] %v3007_v8 }
 0x57f   : > { %v3009_v9 = vpop.eup %3008 }
 0x580   : > { %2201 = vst [vmem:[%s3729_s20 + $0xe8] sm:$0xff] %v3009_v9 }
 0x581   : > { %v3011_v53 = vpop.eup %3010 }
 0x582   : > { %2202 = vst [vmem:[%s3729_s20 + $0xf0] sm:$0xff] %v3011_v53 }
 0x583   : > { %v3013_v10 = vpop.eup %3012 }
 0x584   : > { %2203 = vst [vmem:[%s3729_s20 + $0xf8] sm:$0xff] %v3013_v10 }
 0x585   : > { %3027 = shalt.err (!%p3024_p3)
}
 0x586   : > { %s3028_s26 = scalar_lea.hbm %s3780_s17, 4096  ;;  %s3032_s30 = scalar_lea.hbm %s3842_s14, 8192 }
 0x587   : > { %p3029_p4 = scmp.ne.s32.totalorder %s3780_s17, %s3028_s26  ;;  %p3033_p9 = scmp.lt.s32.totalorder %s3780_s17, %s3842_s14 }
 0x588   : > { %p3034_p10 = scmp.lt.s32.totalorder %s3032_s30, %s3028_s26 }
 0x589   : > { %p3030_p7 = pnand %p3029_p4, %p3198_p5 }
 0x58a   : > { %p3035_p11 = por %p3034_p10, %p3033_p9 }
 0x58b   : > { %p3031_p8 = pneg %p3030_p7 }
 0x58d   : > { %p3036_p12 = pnand %p3035_p11, %p3031_p8 }
 0x58f   : > { %3039 = shalt.err (!%p3036_p12)
}
 0x590   : > { %s3078_s22 = smov 256   ;;  %s3079_s23 = smov 16  }
 0x591   : > { %2700 = dma.vmem_to_hbm [thread:$0]  (%p3198_p5), %s3782_s24, 4096, %s3780_s17, %s3788_s29, %s3078_s22, %s3078_s22, %s3079_s23  }
 0x592 PF: > { %s3860_s27 = sld [smem:[#allocation5_spill]]  ;;  %p2706_p13 = scmp.ge.s32.totalorder %s3074_s21, 2 }
 0x594   : > { %p2703_p0 = pnand %p2706_p13, %p3202_p6 }
 0x596   : > { %p2704_p1 = pneg %p2703_p0 }
 0x598   : > { %s2276_s25 = sand.u32 1, %s3860_s27  }
 0x599   : > { %s2277_s26 = scalar_lea.sflag [#allocation3], %s2276_s25 }
 0x59a   : > { %3057 = dma.done.wait (%p2704_p1), %s2277_s26, 4096  }
 0x59b   : > { %3059 = vsyncadd (%p2704_p1), %s2277_s26, 4294963200  ;;  %s3862_s21 = sld [smem:[#allocation7_spill]]  ;;  %s3865_s18 = smov %s3066_s19 }
 0x59c   : > { %s3863_s20 = sld [smem:[#allocation6_spill]] }
 0x59d   : > { %s3864_s30 = sld [smem:[#allocation8_spill]] }
 0x5a1   : > { %p26_p2 = scmp.ge.s32.totalorder %s3862_s21, 4  }
 0x5a2   : > { %s3866_s19 = smov %s3863_s20 }
 0x5a3   : > { %s3867_s20 = smov %s3864_s30  ;;  %28 = sbr.rel (!%p26_p2) target bundleno = 5 (0x5), region = 126 }
 0x5a8   :  { %2291 = vsyncpa [#allocation3], 1 }
 0x5a9   :  { %2293 = vsyncpa [#allocation3 + $0x1], 1 }

</bundles_post_ra>
